<compile_context>
chip_gen: v6e
topology: v6e:2x2x1
jax: 0.10.0
libtpu: 0.0.40
codegen_flags: <defaults>
</compile_context>

<pallas_src>
import jax
import jax.numpy as jnp
from jax import lax
from jax.experimental import pallas as pl
from jax.experimental.pallas import tpu as pltpu

EMBED_DIM = 32
NUM_CLASSES = 10
IMG_FEATS = 784                     # 1 * 28 * 28
IN_FEATS = IMG_FEATS + EMBED_DIM    # 816
K1_PAD = 896                        # 7 * 128: lane-aligned K for the (padded) first layer
H1 = 512
H2 = 256
FUSED_MAX_ROWS = 512                # single-fused-kernel path up to this many batch rows


def _round_up(x, m):
    return (x + m - 1) // m * m


def _leaky_relu(x, slope=0.2):
    return jnp.where(x > 0, x, slope * x)


def _sigmoid(x):
    # exact sigmoid (no approx reciprocal): guarantees out in [0, 1] for the asserts / BCE
    return 1.0 / (1.0 + jnp.exp(-x))


# --------------------- Fused kernel (feature net + stats + head) ---------------------
def _fused_kernel(n_ref, x_ref, w1_ref, b1_ref, w2_ref, b2_ref,
                  w3a_ref, w3b_ref, b3_ref, out_ref):
    """Whole forward for one resident batch.

    x_ref:  (Bp, 896) bf16 -- cols 0:784 image, 784:816 label embedding, rest zero pad.
    out_ref: (1, Bp) f32   -- lane-dense sigmoid outputs (padded rows are garbage).
    """
    n = n_ref[0]
    n_f = n.astype(jnp.float32)

    h1 = jnp.dot(x_ref[...], w1_ref[...], preferred_element_type=jnp.float32)
    h1 = _leaky_relu(h1 + b1_ref[...])                                  # (Bp, 512) f32
    h2 = jnp.dot(h1.astype(jnp.bfloat16), w2_ref[...],
                 preferred_element_type=jnp.float32)
    h2 = _leaky_relu(h2 + b2_ref[...])                                  # (Bp, 256) f32

    # Masked, unbiased minibatch stddev (two-pass; matches torch features.std(0).mean()).
    rows = lax.broadcasted_iota(jnp.int32, (h2.shape[0], 1), 0)         # (Bp, 1) iota
    mask = (rows < n).astype(jnp.float32)
    mean = jnp.sum(h2 * mask, axis=0, keepdims=True) / n_f              # (1, 256)
    diff = (h2 - mean) * mask
    var = jnp.sum(diff * diff, axis=0, keepdims=True) / (n_f - 1.0)
    stddev = jnp.mean(jnp.sqrt(var))                                    # scalar

    # 256->1 projection as w3a(8,256) @ h2^T -> (8, Bp): lane-dense result & store.
    # (All 8 rows of w3a are identical copies; row 0 is used.)
    lg = lax.dot_general(w3a_ref[...], h2, (((1,), (1,)), ((), ())),
                         preferred_element_type=jnp.float32)            # (8, Bp)
    z = lg[0:1, :] + stddev * w3b_ref[0, 0] + b3_ref[0, 0]              # (1, Bp)
    out_ref[...] = _sigmoid(z)


# --------------- Large-B kernel A: batch-tiled feature net + partial stats -----------
def _feature_stats_kernel(n_ref, x_ref, w1_ref, b1_ref, w2_ref, b2_ref, w3a_ref,
                          logit_ref, sum_ref, sumsq_ref):
    """One batch tile: feature net + per-tile masked stats + per-row 256->1 projection.

    Outputs per tile (8-row, sublane-aligned blocks; lane-dense last dims):
      logit_ref: (8, TB)  -- 8 identical rows of (h2 @ w3a) for this tile
      sum_ref:   (8, 256) -- 8 identical rows of sum_b h2[b, :]   (padded rows masked)
      sumsq_ref: (8, 256) -- 8 identical rows of sum_b h2[b, :]^2 (padded rows masked)
    """
    i = pl.program_id(0)
    n = n_ref[0]
    tb = x_ref.shape[0]

    h1 = jnp.dot(x_ref[...], w1_ref[...], preferred_element_type=jnp.float32)
    h1 = _leaky_relu(h1 + b1_ref[...])
    h2 = jnp.dot(h1.astype(jnp.bfloat16), w2_ref[...],
                 preferred_element_type=jnp.float32)
    h2 = _leaky_relu(h2 + b2_ref[...])                                  # (TB, 256) f32

    rows = i * tb + lax.broadcasted_iota(jnp.int32, (tb, 1), 0)         # global row ids
    mask = (rows < n).astype(jnp.float32)
    h2m = h2 * mask
    sum_ref[...] = jnp.broadcast_to(jnp.sum(h2m, axis=0, keepdims=True), (8, H2))
    sumsq_ref[...] = jnp.broadcast_to(jnp.sum(h2m * h2m, axis=0, keepdims=True), (8, H2))

    logit_ref[...] = lax.dot_general(w3a_ref[...], h2, (((1,), (1,)), ((), ())),
                                     preferred_element_type=jnp.float32)  # (8, TB)


# ----------------------- Large-B kernel B: tiny reduce + sigmoid ---------------------
def _reduce_head_kernel(n_ref, logit_ref, sum_ref, sumsq_ref, w3b_ref, b3_ref, out_ref):
    """Reduce per-tile stats -> stddev, add head bias terms, sigmoid.

    logit_ref / out_ref: (n_tiles*8, TB) f32 (8x row-redundant but lane-dense).
    """
    n_f = n_ref[0].astype(jnp.float32)
    # Each tile's stats were replicated across 8 sublane rows -> divide the sum by 8.
    s = jnp.sum(sum_ref[...], axis=0, keepdims=True) * 0.125            # (1, 256)
    ss = jnp.sum(sumsq_ref[...], axis=0, keepdims=True) * 0.125
    mean = s / n_f
    # TODO(synk): E[x^2]-E[x]^2 is less numerically stable than the fused path's
    # two-pass variance; kept in f32 with a clamp at zero.
    var = jnp.maximum((ss - n_f * mean * mean) / (n_f - 1.0), 0.0)
    stddev = jnp.mean(jnp.sqrt(var))
    z = logit_ref[...] + stddev * w3b_ref[0, 0] + b3_ref[0, 0]
    out_ref[...] = _sigmoid(z)


# ------------------------------------ Wrapper ----------------------------------------
def prepare_params(params):
    """One-time packing of weights into kernel-friendly layouts (hoisted out of the
    forward pass per the perf review — do NOT redo this every step)."""
    w1 = params["w1"].astype(jnp.bfloat16)                              # (816, 512)
    w1p = jnp.zeros((K1_PAD, H1), jnp.bfloat16).at[:IN_FEATS].set(w1)   # zero K-pad rows
    w3 = params["w3"].astype(jnp.float32)                               # (257, 1)
    return dict(
        emb=params["emb"].astype(jnp.float32),                          # (10, 32)
        w1p=w1p,                                                        # (896, 512) bf16
        b1=params["b1"].reshape(1, H1).astype(jnp.float32),
        w2=params["w2"].astype(jnp.bfloat16),                           # (512, 256)
        b2=params["b2"].reshape(1, H2).astype(jnp.float32),
        w3a8=jnp.broadcast_to(w3[:H2, 0].reshape(1, H2), (8, H2)),      # 8 identical rows
        w3b=w3[H2:, :].reshape(1, 1),
        b3=params["b3"].reshape(1, 1).astype(jnp.float32),
    )


def _pack_inputs(x, labels, emb_table, bp):
    """Build the (Bp, 896) bf16 input with the label embedding folded into the pad lanes."""
    b = x.shape[0]
    x_flat = x.reshape(b, -1).astype(jnp.bfloat16)                      # (B, 784)
    emb = emb_table[labels].astype(jnp.bfloat16)                        # (B, 32) gather in XLA glue
    x_pack = jnp.zeros((bp, K1_PAD), jnp.bfloat16)
    x_pack = x_pack.at[:b, :IMG_FEATS].set(x_flat)
    x_pack = x_pack.at[:b, IMG_FEATS:IN_FEATS].set(emb)                 # emb -> pad lanes 784:816
    return x_pack


def discriminator_forward(x, labels, packed):
    B = x.shape[0]
    n_true = jnp.array([B], dtype=jnp.int32)
    smem = pl.BlockSpec(memory_space=pltpu.MemorySpace.SMEM)
    vmem = pl.BlockSpec(memory_space=pltpu.MemorySpace.VMEM)

    if B <= FUSED_MAX_ROWS:
        # -------------------- fused path: one kernel, whole batch resident ------------
        # TODO(synk): single launch => one TensorCore on v7x; acceptable here because
        # launch overhead dominates the tiny MXU work at these batch sizes.
        Bp = _round_up(B, 16)                        # 16-row multiple: full bf16 sublane packing
        x_pack = _pack_inputs(x, labels, packed["emb"], Bp)
        flops = 2 * Bp * (K1_PAD * H1 + H1 * H2 + 8 * H2)
        bytes_accessed = ((x_pack.size + packed["w1p"].size + packed["w2"].size) * 2
                          + (H1 + H2 + 8 * H2 + 2) * 4 + Bp * 4)
        out = pl.pallas_call(
            _fused_kernel,
            out_shape=jax.ShapeDtypeStruct((1, Bp), jnp.float32),       # lane-dense head output
            in_specs=[smem] + [vmem] * 8,
            out_specs=vmem,
            compiler_params=pltpu.CompilerParams(vmem_limit_bytes=32 * 1024 * 1024),
            cost_estimate=pl.CostEstimate(flops=flops, transcendentals=Bp,
                                          bytes_accessed=bytes_accessed),
        )(n_true, x_pack, packed["w1p"], packed["b1"], packed["w2"], packed["b2"],
          packed["w3a8"], packed["w3b"], packed["b3"])
        return out[0, :B].reshape(B, 1)

    # ------------- large-B path: batch-tiled features + tiny reduce head --------------
    TB = 256 if B <= 4096 else 512                   # larger tiles amortize per-step overhead
    Bp = _round_up(B, TB)
    n_tiles = Bp // TB
    x_pack = _pack_inputs(x, labels, packed["emb"], Bp)

    resident = dict(pipeline_mode=pl.Buffered(1))    # constant-index weights: no double-buffer
    flops = 2 * Bp * (K1_PAD * H1 + H1 * H2 + 8 * H2)
    bytes_accessed = ((x_pack.size + packed["w1p"].size + packed["w2"].size) * 2
                      + n_tiles * 8 * (TB + 2 * H2) * 4)
    logit8, sum8, sumsq8 = pl.pallas_call(
        _feature_stats_kernel,
        out_shape=(jax.ShapeDtypeStruct((n_tiles * 8, TB), jnp.float32),
                   jax.ShapeDtypeStruct((n_tiles * 8, H2), jnp.float32),
                   jax.ShapeDtypeStruct((n_tiles * 8, H2), jnp.float32)),
        grid_spec=pltpu.PrefetchScalarGridSpec(
            num_scalar_prefetch=1,                   # n (true batch size) in SMEM
            grid=(n_tiles,),
            in_specs=[
                pl.BlockSpec((TB, K1_PAD), lambda i, n: (i, 0)),
                pl.BlockSpec((K1_PAD, H1), lambda i, n: (0, 0), **resident),
                pl.BlockSpec((1, H1), lambda i, n: (0, 0)),
                pl.BlockSpec((H1, H2), lambda i, n: (0, 0), **resident),
                pl.BlockSpec((1, H2), lambda i, n: (0, 0)),
                pl.BlockSpec((8, H2), lambda i, n: (0, 0)),
            ],
            out_specs=[
                pl.BlockSpec((8, TB), lambda i, n: (i, 0)),
                pl.BlockSpec((8, H2), lambda i, n: (i, 0)),
                pl.BlockSpec((8, H2), lambda i, n: (i, 0)),
            ]),
        compiler_params=pltpu.CompilerParams(
            dimension_semantics=("parallel",),       # both TensorCores on v7x
            vmem_limit_bytes=32 * 1024 * 1024),
        cost_estimate=pl.CostEstimate(flops=flops, transcendentals=0,
                                      bytes_accessed=bytes_accessed),
    )(n_true, x_pack, packed["w1p"], packed["b1"], packed["w2"], packed["b2"],
      packed["w3a8"])

    # TODO(synk): for extremely large Bp (multi-100K rows) give this head a batch grid;
    # its inputs/outputs are only 8*Bp + small elements, ~32x smaller than holding h2.
    out = pl.pallas_call(
        _reduce_head_kernel,
        out_shape=jax.ShapeDtypeStruct((n_tiles * 8, TB), jnp.float32),
        in_specs=[smem] + [vmem] * 5,
        out_specs=vmem,
        compiler_params=pltpu.CompilerParams(vmem_limit_bytes=32 * 1024 * 1024),
    )(n_true, logit8, sum8, sumsq8, packed["w3b"], packed["b3"])

    # drop the 8x row redundancy and the batch padding
    return out.reshape(n_tiles, 8, TB)[:, 0, :].reshape(Bp, 1)[:B]


def init_params(key):
    """Deterministic synthetic parameters matching the PyTorch module's shapes."""
    k_emb, k1, k2, k3 = jax.random.split(key, 4)

    def linear(k, fan_in, fan_out):
        bound = 1.0 / jnp.sqrt(jnp.float32(fan_in))
        kw, kb = jax.random.split(k)
        w = jax.random.uniform(kw, (fan_in, fan_out), jnp.float32, -bound, bound)
        b = jax.random.uniform(kb, (fan_out,), jnp.float32, -bound, bound)
        return w, b

    emb = jax.random.normal(k_emb, (NUM_CLASSES, EMBED_DIM), jnp.float32)
    w1, b1 = linear(k1, IN_FEATS, H1)
    w2, b2 = linear(k2, H1, H2)
    w3, b3 = linear(k3, H2 + 1, 1)
    return dict(emb=emb, w1=w1, b1=b1, w2=w2, b2=b2, w3=w3, b3=b3)


if __name__ == "__main__":
    key = jax.random.PRNGKey(0)
    k_params, k_x, k_lbl = jax.random.split(key, 3)

    params = init_params(k_params)
    packed = prepare_params(params)              # one-time weight packing (hoisted)

    B = 2
    x = jax.random.normal(k_x, (B, 1, 28, 28), jnp.float32)   # NCHW, flattened to 784
    labels = jax.random.randint(k_lbl, (B,), 0, NUM_CLASSES)

    out = discriminator_forward(x, labels, packed)
    out = jax.block_until_ready(out)
    assert out.shape == (B, 1)
    assert bool(jnp.all(jnp.isfinite(out)))
    assert bool(jnp.all((out >= 0.0) & (out <= 1.0)))
    print("KERNEL_OK")
</pallas_src>

<mosaic_0001>
module attributes {stable_mosaic.version = 11 : i64} {
  func.func @_fused_kernel(%arg0: memref<1xi32, #tpu.memory_space<smem>>, %arg1: memref<16x896xbf16, #tpu.memory_space<vmem>>, %arg2: memref<896x512xbf16, #tpu.memory_space<vmem>>, %arg3: memref<1x512xf32, #tpu.memory_space<vmem>>, %arg4: memref<512x256xbf16, #tpu.memory_space<vmem>>, %arg5: memref<1x256xf32, #tpu.memory_space<vmem>>, %arg6: memref<8x256xf32, #tpu.memory_space<vmem>>, %arg7: memref<1x1xf32, #tpu.memory_space<vmem>>, %arg8: memref<1x1xf32, #tpu.memory_space<vmem>>, %arg9: memref<1x16xf32, #tpu.memory_space<vmem>>) attributes {dimension_semantics = [], scalar_prefetch = 0 : i64, scratch_operands = 0 : i64, tpu.core_type = #tpu.core_type<tc>} {
    %c0 = arith.constant 0 : index
    %0 = memref.load %arg0[%c0] : memref<1xi32, #tpu.memory_space<smem>>
    %1 = arith.sitofp %0 : i32 to f32
    %c0_0 = arith.constant 0 : index
    %c0_1 = arith.constant 0 : index
    %2 = vector.load %arg1[%c0_0, %c0_1] : memref<16x896xbf16, #tpu.memory_space<vmem>>, vector<16x896xbf16>
    %c0_2 = arith.constant 0 : index
    %c0_3 = arith.constant 0 : index
    %3 = vector.load %arg2[%c0_2, %c0_3] : memref<896x512xbf16, #tpu.memory_space<vmem>>, vector<896x512xbf16>
    %cst = arith.constant dense<0.000000e+00> : vector<16x512xf32>
    %4 = tpu.matmul %2, %3, %cst {dimension_numbers = #tpu.dot_dimension_numbers<[1], [0], [0], [1], [0, 0, 1, 1], [], []>} : vector<16x896xbf16>, vector<896x512xbf16>, vector<16x512xf32> -> vector<16x512xf32>
    %c0_4 = arith.constant 0 : index
    %c0_5 = arith.constant 0 : index
    %5 = vector.load %arg3[%c0_4, %c0_5] : memref<1x512xf32, #tpu.memory_space<vmem>>, vector<1x512xf32>
    %6 = vector.broadcast %5 : vector<1x512xf32> to vector<16x512xf32>
    %7 = arith.addf %4, %6 : vector<16x512xf32>
    %cst_6 = arith.constant 0.000000e+00 : f32
    %8 = vector.broadcast %cst_6 : f32 to vector<16x512xf32>
    %9 = arith.cmpf ogt, %7, %8 : vector<16x512xf32>
    %cst_7 = arith.constant 2.000000e-01 : f32
    %10 = vector.broadcast %cst_7 : f32 to vector<16x512xf32>
    %11 = arith.mulf %10, %7 : vector<16x512xf32>
    %12 = arith.select %9, %7, %11 : vector<16x512xi1>, vector<16x512xf32>
    %13 = arith.truncf %12 : vector<16x512xf32> to vector<16x512xbf16>
    %c0_8 = arith.constant 0 : index
    %c0_9 = arith.constant 0 : index
    %14 = vector.load %arg4[%c0_8, %c0_9] : memref<512x256xbf16, #tpu.memory_space<vmem>>, vector<512x256xbf16>
    %cst_10 = arith.constant dense<0.000000e+00> : vector<16x256xf32>
    %15 = tpu.matmul %13, %14, %cst_10 {dimension_numbers = #tpu.dot_dimension_numbers<[1], [0], [0], [1], [0, 0, 1, 1], [], []>} : vector<16x512xbf16>, vector<512x256xbf16>, vector<16x256xf32> -> vector<16x256xf32>
    %c0_11 = arith.constant 0 : index
    %c0_12 = arith.constant 0 : index
    %16 = vector.load %arg5[%c0_11, %c0_12] : memref<1x256xf32, #tpu.memory_space<vmem>>, vector<1x256xf32>
    %17 = vector.broadcast %16 : vector<1x256xf32> to vector<16x256xf32>
    %18 = arith.addf %15, %17 : vector<16x256xf32>
    %cst_13 = arith.constant 0.000000e+00 : f32
    %19 = vector.broadcast %cst_13 : f32 to vector<16x256xf32>
    %20 = arith.cmpf ogt, %18, %19 : vector<16x256xf32>
    %cst_14 = arith.constant 2.000000e-01 : f32
    %21 = vector.broadcast %cst_14 : f32 to vector<16x256xf32>
    %22 = arith.mulf %21, %18 : vector<16x256xf32>
    %23 = arith.select %20, %18, %22 : vector<16x256xi1>, vector<16x256xf32>
    %24 = tpu.iota {dimensions = array<i32: 0>} : vector<16x1xi32>
    %25 = vector.broadcast %0 : i32 to vector<16x1xi32>
    %26 = arith.cmpi slt, %24, %25 : vector<16x1xi32>
    %27 = arith.extui %26 : vector<16x1xi1> to vector<16x1xi32>
    %28 = arith.sitofp %27 : vector<16x1xi32> to vector<16x1xf32>
    %29 = vector.broadcast %28 : vector<16x1xf32> to vector<16x256xf32>
    %30 = arith.mulf %23, %29 : vector<16x256xf32>
    %cst_15 = arith.constant dense<0.000000e+00> : vector<256xf32>
    %31 = vector.multi_reduction <add>, %30, %cst_15 [0] : vector<16x256xf32> to vector<256xf32>
    %32 = vector.shape_cast %31 : vector<256xf32> to vector<1x256xf32>
    %33 = vector.broadcast %1 : f32 to vector<1x256xf32>
    %34 = arith.divf %32, %33 : vector<1x256xf32>
    %35 = vector.broadcast %34 : vector<1x256xf32> to vector<16x256xf32>
    %36 = arith.subf %23, %35 : vector<16x256xf32>
    %37 = vector.broadcast %28 : vector<16x1xf32> to vector<16x256xf32>
    %38 = arith.mulf %36, %37 : vector<16x256xf32>
    %39 = arith.mulf %38, %38 : vector<16x256xf32>
    %cst_16 = arith.constant dense<0.000000e+00> : vector<256xf32>
    %40 = vector.multi_reduction <add>, %39, %cst_16 [0] : vector<16x256xf32> to vector<256xf32>
    %41 = vector.shape_cast %40 : vector<256xf32> to vector<1x256xf32>
    %cst_17 = arith.constant 1.000000e+00 : f32
    %42 = arith.subf %1, %cst_17 : f32
    %43 = vector.broadcast %42 : f32 to vector<1x256xf32>
    %44 = arith.divf %41, %43 : vector<1x256xf32>
    %45 = math.sqrt %44 : vector<1x256xf32>
    %46 = vector.shape_cast %45 : vector<1x256xf32> to vector<1x1x256xf32>
    %cst_18 = arith.constant dense<0.000000e+00> : vector<1xf32>
    %47 = vector.multi_reduction <add>, %46, %cst_18 [1, 2] : vector<1x1x256xf32> to vector<1xf32>
    %48 = vector.shape_cast %47 : vector<1xf32> to vector<1x1x1xf32>
    %49 = vector.extract %48[0, 0, 0] : f32 from vector<1x1x1xf32>
    %cst_19 = arith.constant 2.560000e+02 : f32
    %50 = arith.divf %49, %cst_19 : f32
    %c0_20 = arith.constant 0 : index
    %c0_21 = arith.constant 0 : index
    %51 = vector.load %arg6[%c0_20, %c0_21] : memref<8x256xf32, #tpu.memory_space<vmem>>, vector<8x256xf32>
    %cst_22 = arith.constant dense<0.000000e+00> : vector<8x16xf32>
    %52 = tpu.matmul %51, %23, %cst_22 {dimension_numbers = #tpu.dot_dimension_numbers<[1], [1], [0], [0], [0, 0, 1, 0], [], []>} : vector<8x256xf32>, vector<16x256xf32>, vector<8x16xf32> -> vector<8x16xf32>
    %53 = vector.extract_strided_slice %52 {offsets = [0, 0], sizes = [1, 16], strides = [1, 1]} : vector<8x16xf32> to vector<1x16xf32>
    %c0_23 = arith.constant 0 : index
    %c0_24 = arith.constant 0 : index
    %54 = vector.load %arg7[%c0_23, %c0_24] : memref<1x1xf32, #tpu.memory_space<vmem>>, vector<1x1xf32>
    %55 = vector.extract %54[0, 0] : f32 from vector<1x1xf32>
    %56 = arith.mulf %50, %55 : f32
    %57 = vector.broadcast %56 : f32 to vector<1x16xf32>
    %58 = arith.addf %53, %57 : vector<1x16xf32>
    %c0_25 = arith.constant 0 : index
    %c0_26 = arith.constant 0 : index
    %59 = vector.load %arg8[%c0_25, %c0_26] : memref<1x1xf32, #tpu.memory_space<vmem>>, vector<1x1xf32>
    %60 = vector.extract %59[0, 0] : f32 from vector<1x1xf32>
    %61 = vector.broadcast %60 : f32 to vector<1x16xf32>
    %62 = arith.addf %58, %61 : vector<1x16xf32>
    %cst_27 = arith.constant 0.000000e+00 : f32
    %63 = vector.broadcast %cst_27 : f32 to vector<1x16xf32>
    %64 = arith.subf %63, %62 : vector<1x16xf32>
    %65 = math.exp %64 : vector<1x16xf32>
    %cst_28 = arith.constant 1.000000e+00 : f32
    %66 = vector.broadcast %cst_28 : f32 to vector<1x16xf32>
    %67 = arith.addf %66, %65 : vector<1x16xf32>
    %cst_29 = arith.constant 1.000000e+00 : f32
    %68 = vector.broadcast %cst_29 : f32 to vector<1x16xf32>
    %69 = arith.divf %68, %67 : vector<1x16xf32>
    %c0_30 = arith.constant 0 : index
    %c0_31 = arith.constant 0 : index
    %70 = vector.load %arg9[%c0_30, %c0_31] : memref<1x16xf32, #tpu.memory_space<vmem>>, vector<1x16xf32>
    tpu.vector_store %arg9[%c0_30, %c0_31], %69 {strides = array<i32>} : memref<1x16xf32, #tpu.memory_space<vmem>>, vector<1x16xf32>,
    return
  }
}

</mosaic_0001>

<bundles_post_ra>
// kernel: tpu_custom_call.1
= control target key start
LH: loop header
LB: loop body
LE: loop exit
PB: predicated region body
PF: predicated region fallthrough
CT: control target
= control target key end

     0   :  { %s3598_s0 = inlined_call_operand.<no memory space> [shape: s32[1], index: 0, kind: input, shape index: {}]   ;;  %s3599_s1 = inlined_call_operand.hbm [shape: bf16[16,896], index: 1, kind: input, shape index: {}]   ;;  %s3600_s2 = inlined_call_operand.hbm [shape: bf16[896,512], index: 2, kind: input, shape index: {}]   ;;  %s3601_s3 = inlined_call_operand.vmem [shape: f32[1,512], index: 3, kind: input, shape index: {}]   ;;  %s3602_s4 = inlined_call_operand.hbm [shape: bf16[512,256], index: 4, kind: input, shape index: {}]   ;;  %s3603_s5 = inlined_call_operand.vmem [shape: f32[1,256], index: 5, kind: input, shape index: {}]   ;;  %s3604_s6 = inlined_call_operand.hbm [shape: f32[8,256], index: 6, kind: input, shape index: {}]   ;;  %s3605_s7 = inlined_call_operand.<no memory space> [shape: f32[1,1], index: 7, kind: input, shape index: {}]   ;;  %s3606_s9 = inlined_call_operand.hbm [shape: f32[1,16], index: 9, kind: output, shape index: {}]   ;;  %s3607_s8 = inlined_call_operand.<no memory space> [shape: f32[1,1], index: 8, kind: input, shape index: {}]  }
   0x1   :  { %v15_v0 = vstv %s3605_s7  ;;  %v17_v1 = vstv %s3607_s8 }
   0x2   :  { %16 = vst [vmem:[#allocation3] sm:$0x1] %v15_v0  ;;  %18 = vst [vmem:[#allocation4] sm:$0x1] %v17_v1 }
   0x3   :  { %19 = vsyncpa [#allocation6], 0 }
   0x4   :  { %20 = vsyncpa [#allocation9], 0 }
   0x5   :  { %21 = vsyncpa [#allocation12], 0 }
   0x6   :  { %22 = vsyncpa [#allocation7], 0  ;;  %s3448_s13 = smov [#allocation8]  }
   0x7   :  { %s42_s14 = sshll.u32 %s3448_s13, 4  ;;  %s43_s14 = int_to_ptr.vmem [resolvable:$true] %s42_s14 }
   0x8   :  { %s3348_s15 = scalar_lea.vmem %s43_s14, 28672  ;;  %p3353_p1 = scmp.lt.s32.totalorder %s43_s14, %s43_s14 }
   0x9   :  { %p3349_p0 = scmp.ne.s32.totalorder %s43_s14, %s3348_s15  ;;  %p3354_p2 = scmp.lt.s32.totalorder %s3348_s15, %s3348_s15 }
   0xb   :  { %p3355_p3 = por %p3354_p2, %p3353_p1 }
   0xd   :  { %p3356_p4 = pnand %p3355_p3, %p3349_p0 }
   0xf   :  { %3359 = shalt.err (!%p3356_p4)
}
  0x10   :  { %s3449_s7 = smov 256   ;;  %s3450_s16 = smov 16  }
  0x11   :  { %48 = dma.hbm_to_vmem [thread:$0]  %s3600_s2, 28672, %s43_s14, [#allocation9], %s3449_s7, %s3449_s7, %s3450_s16  }
  0x12   :  { %s3451_s18 = smov [#allocation5]  }
  0x13   :  { %s30_s19 = sshll.u32 %s3451_s18, 4  ;;  %s31_s19 = int_to_ptr.vmem [resolvable:$true] %s30_s19 }
  0x14   :  { %s3368_s20 = scalar_lea.vmem %s31_s19, 896  ;;  %p3373_p6 = scmp.lt.s32.totalorder %s31_s19, %s31_s19 }
  0x15   :  { %p3369_p5 = scmp.ne.s32.totalorder %s31_s19, %s3368_s20  ;;  %p3374_p7 = scmp.lt.s32.totalorder %s3368_s20, %s3368_s20 }
  0x17   :  { %p3375_p8 = por %p3374_p7, %p3373_p6 }
  0x19   :  { %p3376_p9 = pnand %p3375_p8, %p3369_p5 }
  0x1b   :  { %3379 = shalt.err (!%p3376_p9)
}
  0x1c   :  { %s3452_s21 = smov 448   ;;  %s3453_s22 = smov 28  }
  0x1d   :  { %36 = dma.hbm_to_vmem [thread:$0]  %s3599_s1, 896, %s31_s19, [#allocation6], %s3452_s21, %s3452_s21, %s3453_s22  }
  0x1e   :  { %s3454_s25 = smov [#allocation10]  }
  0x1f   :  { %s56_s26 = sshll.u32 %s3454_s25, 4  ;;  %s57_s26 = int_to_ptr.vmem [resolvable:$true] %s56_s26 }
  0x20   :  { %s3388_s2 = scalar_lea.vmem %s57_s26, 8192  ;;  %p3393_p11 = scmp.lt.s32.totalorder %s57_s26, %s57_s26 }
  0x21   :  { %p3389_p10 = scmp.ne.s32.totalorder %s57_s26, %s3388_s2  ;;  %p3394_p12 = scmp.lt.s32.totalorder %s3388_s2, %s3388_s2 }
  0x23   :  { %p3395_p13 = por %p3394_p12, %p3393_p11 }
  0x25   :  { %p3396_p0 = pnand %p3395_p13, %p3389_p10 }
  0x27   :  { %3399 = shalt.err (!%p3396_p0)
}
  0x28   :  { %s3455_s27 = smov 128   ;;  %s3456_s28 = smov 8  }
  0x29   :  { %62 = dma.hbm_to_vmem [thread:$0]  %s3602_s4, 8192, %s57_s26, [#allocation9], %s3455_s27, %s3455_s27, %s3456_s28  }
  0x2a   :  { %s3457_s10 = smov [#allocation11]  }
  0x2b   :  { %s71_s11 = sshll.u32 %s3457_s10, 4  ;;  %s72_s11 = int_to_ptr.vmem [resolvable:$true] %s71_s11 }
  0x2c   :  { %s3408_s1 = scalar_lea.vmem %s72_s11, 256  ;;  %p3413_p2 = scmp.lt.s32.totalorder %s72_s11, %s72_s11 }
  0x2d   :  { %p3409_p1 = scmp.ne.s32.totalorder %s72_s11, %s3408_s1  ;;  %p3414_p3 = scmp.lt.s32.totalorder %s3408_s1, %s3408_s1 }
  0x2f   :  { %p3415_p4 = por %p3414_p3, %p3413_p2 }
  0x31   :  { %p3416_p5 = pnand %p3415_p4, %p3409_p1 }
  0x33   :  { %3419 = shalt.err (!%p3416_p5)
}
  0x34   :  { %74 = dma.hbm_to_vmem [thread:$0]  %s3604_s6, 256, %s72_s11, [#allocation12]  }
  0x35   :  { %3440 = dma.done.wait [#allocation6], 896  }
  0x36   :  { %3441 = vsyncadd [#allocation6], 4294966400 }
  0x37   :  { %3442 = dma.done.wait [#allocation9], 36864  }
  0x38   :  { %3443 = vsyncadd [#allocation9], 4294930432 }
  0x39   :  { %3444 = dma.done.wait [#allocation12], 256  }
  0x3a   :  { %3445 = vsyncadd [#allocation12], 4294967040  ;;  %v2886_v2 = vld [vmem:[#allocation8 + $0xe4] ss:$16 sps:$4 sm:$0xff]   ;;  %v2890_v4 = vld [vmem:[#allocation8 + $0xe0] ss:$16 sps:$4 sm:$0xff]   ;;  %s93_s17 = scvt.s32.f32 %s3598_s0 }
  0x3b   :  { %v2888_v3 = vld [vmem:[#allocation8 + $0x2e4] ss:$16 sps:$4 sm:$0xff]   ;;  %1504 = vmatprep.subr.bf16.mxu0 %v2886_v2  ;;  %v2891_v5 = vld [vmem:[#allocation8 + $0x2e0] ss:$16 sps:$4 sm:$0xff]   ;;  %v3529_v51 = vld [vmem:[#allocation5 + $0x4] ss:$28 sps:$4 sm:$0xff]  }
  0x3c   :  { %1547 = vmatprep.subr.bf16.mxu1 %v2888_v3  ;;  %v2892_v6 = vld [vmem:[#allocation8 + $0xc4] ss:$16 sps:$4 sm:$0xff]   ;;  %1505 = vmatpush1.bf16.msra.mxu0 %v2890_v4  ;;  %v2896_v8 = vld [vmem:[#allocation8 + $0xc0] ss:$16 sps:$4 sm:$0xff]   ;;  %s2866_s21 = sadd.f32 -1.0, %s93_s17  ;;  %s3460_s26 = smov [#allocation13]  }
  0x3d   :  { %1548 = vmatpush1.bf16.msra.mxu1 %v2891_v5  ;;  %v2894_v7 = vld [vmem:[#allocation8 + $0x2c4] ss:$16 sps:$4 sm:$0xff]   ;;  %1506 = vmatprep.subr.bf16.mxu0 %v2892_v6  ;;  %v2897_v9 = vld [vmem:[#allocation8 + $0x2c0] ss:$16 sps:$4 sm:$0xff]   ;;  %s2558_s2 = sshll.u32 %s3460_s26, 4  ;;  %s2559_s2 = int_to_ptr.vmem [resolvable:$true] %s2558_s2 }
  0x3e   :  { %1549 = vmatprep.subr.bf16.mxu1 %v2894_v7  ;;  %v2898_v10 = vld [vmem:[#allocation8 + $0xa4] ss:$16 sps:$4 sm:$0xff]   ;;  %v2902_v12 = vld [vmem:[#allocation8 + $0xa0] ss:$16 sps:$4 sm:$0xff]   ;;  %1536 = vmatprep.mubr.bf16.mxu0 %v3529_v51  ;;  %s3420_s27 = scalar_lea.vmem %s2559_s2, 16  ;;  %s3424_s28 = scalar_lea.vmem %s2559_s2, 32 }
  0x3f   :  { %v2900_v11 = vld [vmem:[#allocation8 + $0x2a4] ss:$16 sps:$4 sm:$0xff]   ;;  %v2903_v13 = vld [vmem:[#allocation8 + $0x2a0] ss:$16 sps:$4 sm:$0xff]   ;;  %p3421_p6 = scmp.ne.s32.totalorder %s2559_s2, %s3420_s27  ;;  %p3425_p7 = scmp.lt.s32.totalorder %s2559_s2, %s2559_s2 }
  0x40   :  { %1507 = vmatpush1.bf16.msra.mxu0 %v2896_v8  ;;  %v2904_v14 = vld [vmem:[#allocation8 + $0x84] ss:$16 sps:$4 sm:$0xff]   ;;  %v2908_v16 = vld [vmem:[#allocation8 + $0x80] ss:$16 sps:$4 sm:$0xff]   ;;  %p3426_p8 = scmp.lt.s32.totalorder %s3424_s28, %s3420_s27 }
  0x41   :  { %1550 = vmatpush1.bf16.msra.mxu1 %v2897_v9  ;;  %1508 = vmatprep.subr.bf16.mxu0 %v2898_v10  ;;  %v2906_v15 = vld [vmem:[#allocation8 + $0x284] ss:$16 sps:$4 sm:$0xff]   ;;  %v2909_v17 = vld [vmem:[#allocation8 + $0x280] ss:$16 sps:$4 sm:$0xff]  }
  0x42   :  { %1551 = vmatprep.subr.bf16.mxu1 %v2900_v11  ;;  %v2910_v18 = vld [vmem:[#allocation8 + $0x64] ss:$16 sps:$4 sm:$0xff]   ;;  %v2914_v20 = vld [vmem:[#allocation8 + $0x60] ss:$16 sps:$4 sm:$0xff]   ;;  %p3427_p9 = por %p3426_p8, %p3425_p7 }
  0x43   :  { %v2912_v19 = vld [vmem:[#allocation8 + $0x264] ss:$16 sps:$4 sm:$0xff]   ;;  %v2915_v21 = vld [vmem:[#allocation8 + $0x260] ss:$16 sps:$4 sm:$0xff]  }
  0x44   :  { %1509 = vmatpush1.bf16.msra.mxu0 %v2902_v12  ;;  %v2916_v22 = vld [vmem:[#allocation8 + $0x44] ss:$16 sps:$4 sm:$0xff]   ;;  %v2920_v24 = vld [vmem:[#allocation8 + $0x40] ss:$16 sps:$4 sm:$0xff]   ;;  %p3428_p10 = pnand %p3427_p9, %p3421_p6 }
  0x45   :  { %1552 = vmatpush1.bf16.msra.mxu1 %v2903_v13  ;;  %1510 = vmatprep.subr.bf16.mxu0 %v2904_v14  ;;  %v2918_v23 = vld [vmem:[#allocation8 + $0x244] ss:$16 sps:$4 sm:$0xff]   ;;  %v2921_v25 = vld [vmem:[#allocation8 + $0x240] ss:$16 sps:$4 sm:$0xff]  }
  0x46   :  { %1553 = vmatprep.subr.bf16.mxu1 %v2906_v15  ;;  %v2922_v26 = vld [vmem:[#allocation8 + $0x24] ss:$16 sps:$4 sm:$0xff]   ;;  %v2926_v28 = vld [vmem:[#allocation8 + $0x20] ss:$16 sps:$4 sm:$0xff]  }
  0x47   :  { %v2924_v27 = vld [vmem:[#allocation8 + $0x224] ss:$16 sps:$4 sm:$0xff]   ;;  %v2927_v29 = vld [vmem:[#allocation8 + $0x220] ss:$16 sps:$4 sm:$0xff]  }
  0x48   :  { %1511 = vmatpush1.bf16.msra.mxu0 %v2908_v16  ;;  %v2928_v30 = vld [vmem:[#allocation8 + $0x4] ss:$16 sps:$4 sm:$0xff]   ;;  %v2932_v32 = vld [vmem:[#allocation8] ss:$16 sps:$4 sm:$0xff]   ;;  %v3458_v16 = vmov 0  }
  0x49   :  { %1554 = vmatpush1.bf16.msra.mxu1 %v2909_v17  ;;  %1512 = vmatprep.subr.bf16.mxu0 %v2910_v18  ;;  %v2930_v31 = vld [vmem:[#allocation8 + $0x204] ss:$16 sps:$4 sm:$0xff]   ;;  %v2933_v33 = vld [vmem:[#allocation8 + $0x200] ss:$16 sps:$4 sm:$0xff]  }
  0x4a   :  { %1555 = vmatprep.subr.bf16.mxu1 %v2912_v19  ;;  %v2934_v34 = vld [vmem:[#allocation8 + $0x1e4] ss:$16 sps:$4 sm:$0xff]   ;;  %v2938_v36 = vld [vmem:[#allocation8 + $0x1e0] ss:$16 sps:$4 sm:$0xff]  }
  0x4b   :  { %v2936_v35 = vld [vmem:[#allocation8 + $0x3e4] ss:$16 sps:$4 sm:$0xff]   ;;  %v2939_v37 = vld [vmem:[#allocation8 + $0x3e0] ss:$16 sps:$4 sm:$0xff]  }
  0x4c   :  { %1513 = vmatpush1.bf16.msra.mxu0 %v2914_v20  ;;  %v2940_v38 = vld [vmem:[#allocation8 + $0x1c4] ss:$16 sps:$4 sm:$0xff]   ;;  %v2944_v40 = vld [vmem:[#allocation8 + $0x1c0] ss:$16 sps:$4 sm:$0xff]  }
  0x4d   :  { %1556 = vmatpush1.bf16.msra.mxu1 %v2915_v21  ;;  %1514 = vmatprep.subr.bf16.mxu0 %v2916_v22  ;;  %v2942_v39 = vld [vmem:[#allocation8 + $0x3c4] ss:$16 sps:$4 sm:$0xff]   ;;  %v2945_v41 = vld [vmem:[#allocation8 + $0x3c0] ss:$16 sps:$4 sm:$0xff]  }
  0x4e   :  { %1557 = vmatprep.subr.bf16.mxu1 %v2918_v23  ;;  %v2946_v42 = vld [vmem:[#allocation8 + $0x1a4] ss:$16 sps:$4 sm:$0xff]   ;;  %v2950_v44 = vld [vmem:[#allocation8 + $0x1a0] ss:$16 sps:$4 sm:$0xff]  }
  0x4f   :  { %v2948_v43 = vld [vmem:[#allocation8 + $0x3a4] ss:$16 sps:$4 sm:$0xff]   ;;  %v2951_v45 = vld [vmem:[#allocation8 + $0x3a0] ss:$16 sps:$4 sm:$0xff]  }
  0x50   :  { %1515 = vmatpush1.bf16.msra.mxu0 %v2920_v24  ;;  %v2952_v46 = vld [vmem:[#allocation8 + $0x184] ss:$16 sps:$4 sm:$0xff]   ;;  %v2956_v48 = vld [vmem:[#allocation8 + $0x180] ss:$16 sps:$4 sm:$0xff]  }
  0x51   :  { %1558 = vmatpush1.bf16.msra.mxu1 %v2921_v25  ;;  %1516 = vmatprep.subr.bf16.mxu0 %v2922_v26  ;;  %v2954_v47 = vld [vmem:[#allocation8 + $0x384] ss:$16 sps:$4 sm:$0xff]   ;;  %v2957_v49 = vld [vmem:[#allocation8 + $0x380] ss:$16 sps:$4 sm:$0xff]  }
  0x52   :  { %1559 = vmatprep.subr.bf16.mxu1 %v2924_v27  ;;  %v2958_v50 = vld [vmem:[#allocation8 + $0x164] ss:$16 sps:$4 sm:$0xff]   ;;  %v2962_v54 = vld [vmem:[#allocation8 + $0x160] ss:$16 sps:$4 sm:$0xff]  }
  0x53   :  { %v2960_v52 = vld [vmem:[#allocation8 + $0x364] ss:$16 sps:$4 sm:$0xff]   ;;  %v2963_v55 = vld [vmem:[#allocation8 + $0x360] ss:$16 sps:$4 sm:$0xff]  }
  0x54   :  { %1517 = vmatpush1.bf16.msra.mxu0 %v2926_v28  ;;  %v3531_v53 = vld [vmem:[#allocation5 + $0xc] ss:$28 sps:$4 sm:$0xff]   ;;  %v3535_v6 = vld [vmem:[#allocation5] ss:$28 sps:$4 sm:$0xff]  }
  0x55   :  { %1560 = vmatpush1.bf16.msra.mxu1 %v2927_v29  ;;  %1518 = vmatprep.subr.bf16.mxu0 %v2928_v30  ;;  %v2964_v56 = vld [vmem:[#allocation8 + $0x144] ss:$16 sps:$4 sm:$0xff]   ;;  %v2968_v58 = vld [vmem:[#allocation8 + $0x140] ss:$16 sps:$4 sm:$0xff]  }
  0x56   :  { %1561 = vmatprep.subr.bf16.mxu1 %v2930_v31  ;;  %1579 = vmatprep.mubr.bf16.mxu1 %v3531_v53  ;;  %v2966_v57 = vld [vmem:[#allocation8 + $0x344] ss:$16 sps:$4 sm:$0xff]   ;;  %v2969_v59 = vld [vmem:[#allocation8 + $0x340] ss:$16 sps:$4 sm:$0xff]  }
  0x57   :  { %v2970_v60 = vld [vmem:[#allocation8 + $0x124] ss:$16 sps:$4 sm:$0xff]   ;;  %v2974_v62 = vld [vmem:[#allocation8 + $0x120] ss:$16 sps:$4 sm:$0xff]  }
  0x58   :  { %1519 = vmatpush1.bf16.msra.mxu0 %v2932_v32  ;;  %v2972_v61 = vld [vmem:[#allocation8 + $0x324] ss:$16 sps:$4 sm:$0xff]   ;;  %v2975_v63 = vld [vmem:[#allocation8 + $0x320] ss:$16 sps:$4 sm:$0xff]  }
  0x59   :  { %1562 = vmatpush1.bf16.msra.mxu1 %v2933_v33  ;;  %1520 = vmatprep.subr.bf16.mxu0 %v2934_v34  ;;  %v2976_v0 = vld [vmem:[#allocation8 + $0x104] ss:$16 sps:$4 sm:$0xff]   ;;  %v2980_v2 = vld [vmem:[#allocation8 + $0x100] ss:$16 sps:$4 sm:$0xff]  }
  0x5a   :  { %1563 = vmatprep.subr.bf16.mxu1 %v2936_v35  ;;  %v2978_v1 = vld [vmem:[#allocation8 + $0x304] ss:$16 sps:$4 sm:$0xff]   ;;  %v2981_v3 = vld [vmem:[#allocation8 + $0x300] ss:$16 sps:$4 sm:$0xff]  }
  0x5b   :  { %v2990_v4 = vld [vmem:[#allocation8 + $0x4e4] ss:$16 sps:$4 sm:$0xff]   ;;  %v3537_v7 = vld [vmem:[#allocation5 + $0x8] ss:$28 sps:$4 sm:$0xff]  }
  0x5c   :  { %1521 = vmatpush2.bf16.msra.mxu0 %v2938_v36  ;;  %v2993_v5 = vld [vmem:[#allocation8 + $0x6e4] ss:$16 sps:$4 sm:$0xff]   ;;  %v2988_v8 = vld [vmem:[#allocation8 + $0x4e0] ss:$16 sps:$4 sm:$0xff]  }
  0x5d   :  { %1564 = vmatpush2.bf16.msra.mxu1 %v2939_v37  ;;  %1522 = vmatprep.subr.bf16.mxu0 %v2940_v38  ;;  %v2991_v9 = vld [vmem:[#allocation8 + $0x6e0] ss:$16 sps:$4 sm:$0xff]   ;;  %v2996_v10 = vld [vmem:[#allocation8 + $0x4c4] ss:$16 sps:$4 sm:$0xff]   ;;  %v3542_v37 = vld [vmem:[#allocation5 + $0x14] ss:$28 sps:$4 sm:$0xff]  }
  0x5e   :  { %1565 = vmatprep.subr.bf16.mxu1 %v2942_v39  ;;  %v2999_v11 = vld [vmem:[#allocation8 + $0x6c4] ss:$16 sps:$4 sm:$0xff]   ;;  %v2994_v12 = vld [vmem:[#allocation8 + $0x4c0] ss:$16 sps:$4 sm:$0xff]  }
  0x5f   :  { %v2997_v13 = vld [vmem:[#allocation8 + $0x6c0] ss:$16 sps:$4 sm:$0xff]   ;;  %v3002_v14 = vld [vmem:[#allocation8 + $0x4a4] ss:$16 sps:$4 sm:$0xff]  }
  0x60   :  { %1523 = vmatpush2.bf16.msra.mxu0 %v2944_v40  ;;  %v3005_v15 = vld [vmem:[#allocation8 + $0x6a4] ss:$16 sps:$4 sm:$0xff]   ;;  %v3000_v17 = vld [vmem:[#allocation8 + $0x4a0] ss:$16 sps:$4 sm:$0xff]  }
  0x61   :  { %1566 = vmatpush2.bf16.msra.mxu1 %v2945_v41  ;;  %1524 = vmatprep.subr.bf16.mxu0 %v2946_v42  ;;  %v3003_v18 = vld [vmem:[#allocation8 + $0x6a0] ss:$16 sps:$4 sm:$0xff]   ;;  %v3008_v19 = vld [vmem:[#allocation8 + $0x484] ss:$16 sps:$4 sm:$0xff]   ;;  %v3042_v41 = vld [vmem:[#allocation8 + $0xec] ss:$16 sps:$4 sm:$0xff]  }
  0x62   :  { %1567 = vmatprep.subr.bf16.mxu1 %v2948_v43  ;;  %v3011_v20 = vld [vmem:[#allocation8 + $0x684] ss:$16 sps:$4 sm:$0xff]   ;;  %v3006_v21 = vld [vmem:[#allocation8 + $0x480] ss:$16 sps:$4 sm:$0xff]  }
  0x63   :  { %v3009_v22 = vld [vmem:[#allocation8 + $0x680] ss:$16 sps:$4 sm:$0xff]   ;;  %v3014_v23 = vld [vmem:[#allocation8 + $0x464] ss:$16 sps:$4 sm:$0xff]  }
  0x64   :  { %1525 = vmatpush2.bf16.msra.mxu0 %v2950_v44  ;;  %v3017_v24 = vld [vmem:[#allocation8 + $0x664] ss:$16 sps:$4 sm:$0xff]   ;;  %v3012_v25 = vld [vmem:[#allocation8 + $0x460] ss:$16 sps:$4 sm:$0xff]   ;;  %v3040_v44 = vld [vmem:[#allocation8 + $0xe8] ss:$16 sps:$4 sm:$0xff]  }
  0x65   :  { %1568 = vmatpush2.bf16.msra.mxu1 %v2951_v45  ;;  %1526 = vmatprep.subr.bf16.mxu0 %v2952_v46  ;;  %v3015_v26 = vld [vmem:[#allocation8 + $0x660] ss:$16 sps:$4 sm:$0xff]   ;;  %v3020_v27 = vld [vmem:[#allocation8 + $0x444] ss:$16 sps:$4 sm:$0xff]   ;;  %v3048_v46 = vld [vmem:[#allocation8 + $0xcc] ss:$16 sps:$4 sm:$0xff]  }
  0x66   :  { %1569 = vmatprep.subr.bf16.mxu1 %v2954_v47  ;;  %v3023_v28 = vld [vmem:[#allocation8 + $0x644] ss:$16 sps:$4 sm:$0xff]   ;;  %v3018_v29 = vld [vmem:[#allocation8 + $0x440] ss:$16 sps:$4 sm:$0xff]  }
  0x67   :  { %v3021_v30 = vld [vmem:[#allocation8 + $0x640] ss:$16 sps:$4 sm:$0xff]   ;;  %v3026_v31 = vld [vmem:[#allocation8 + $0x424] ss:$16 sps:$4 sm:$0xff]  }
  0x68   :  { %1527 = vmatpush2.bf16.msra.mxu0 %v2956_v48  ;;  %v3029_v32 = vld [vmem:[#allocation8 + $0x624] ss:$16 sps:$4 sm:$0xff]   ;;  %v3024_v33 = vld [vmem:[#allocation8 + $0x420] ss:$16 sps:$4 sm:$0xff]   ;;  %v3046_v48 = vld [vmem:[#allocation8 + $0xc8] ss:$16 sps:$4 sm:$0xff]  }
  0x69   :  { %1570 = vmatpush2.bf16.msra.mxu1 %v2957_v49  ;;  %1528 = vmatprep.subr.bf16.mxu0 %v2958_v50  ;;  %v3027_v34 = vld [vmem:[#allocation8 + $0x620] ss:$16 sps:$4 sm:$0xff]   ;;  %v3032_v35 = vld [vmem:[#allocation8 + $0x404] ss:$16 sps:$4 sm:$0xff]   ;;  %v3054_v50 = vld [vmem:[#allocation8 + $0xac] ss:$16 sps:$4 sm:$0xff]  }
  0x6a   :  { %1571 = vmatprep.subr.bf16.mxu1 %v2960_v52  ;;  %v3035_v36 = vld [vmem:[#allocation8 + $0x604] ss:$16 sps:$4 sm:$0xff]   ;;  %v3030_v38 = vld [vmem:[#allocation8 + $0x400] ss:$16 sps:$4 sm:$0xff]  }
  0x6b   :  { %v3033_v39 = vld [vmem:[#allocation8 + $0x600] ss:$16 sps:$4 sm:$0xff]   ;;  %v3038_v40 = vld [vmem:[#allocation8 + $0x5e4] ss:$16 sps:$4 sm:$0xff]  }
  0x6c   :  { %1529 = vmatpush2.bf16.msra.mxu0 %v2962_v54  ;;  %v3036_v42 = vld [vmem:[#allocation8 + $0x5e0] ss:$16 sps:$4 sm:$0xff]   ;;  %v3045_v45 = vld [vmem:[#allocation8 + $0x5c4] ss:$16 sps:$4 sm:$0xff]   ;;  %v3052_v54 = vld [vmem:[#allocation8 + $0xa8] ss:$16 sps:$4 sm:$0xff]  }
  0x6d   :  { %1572 = vmatpush2.bf16.msra.mxu1 %v2963_v55  ;;  %1530 = vmatprep.subr.bf16.mxu0 %v2964_v56  ;;  %v3545_v43 = vld [vmem:[#allocation5 + $0x18] ss:$28 sps:$4 sm:$0xff]   ;;  %v3051_v49 = vld [vmem:[#allocation8 + $0x5a4] ss:$16 sps:$4 sm:$0xff]  }
  0x6e   :  { %1573 = vmatprep.subr.bf16.mxu1 %v2966_v57  ;;  %v3043_v47 = vld [vmem:[#allocation8 + $0x5c0] ss:$16 sps:$4 sm:$0xff]   ;;  %v3057_v55 = vld [vmem:[#allocation8 + $0x584] ss:$16 sps:$4 sm:$0xff]   ;;  %v3060_v56 = vld [vmem:[#allocation8 + $0x8c] ss:$16 sps:$4 sm:$0xff]  }
  0x6f   :  { %v3049_v52 = vld [vmem:[#allocation8 + $0x5a0] ss:$16 sps:$4 sm:$0xff]  }
  0x70   :  { %1531 = vmatpush2.bf16.msra.mxu0 %v2968_v58  ;;  %v3055_v57 = vld [vmem:[#allocation8 + $0x580] ss:$16 sps:$4 sm:$0xff]   ;;  %v3058_v58 = vld [vmem:[#allocation8 + $0x88] ss:$16 sps:$4 sm:$0xff]  }
  0x71   :  { %1574 = vmatpush2.bf16.msra.mxu1 %v2969_v59  ;;  %1532 = vmatprep.subr.bf16.mxu0 %v2970_v60  ;;  %v3063_v59 = vld [vmem:[#allocation8 + $0x564] ss:$16 sps:$4 sm:$0xff]   ;;  %v3066_v60 = vld [vmem:[#allocation8 + $0x6c] ss:$16 sps:$4 sm:$0xff]  }
  0x72   :  { %1575 = vmatprep.subr.bf16.mxu1 %v2972_v61  ;;  %v3061_v61 = vld [vmem:[#allocation8 + $0x560] ss:$16 sps:$4 sm:$0xff]  }
  0x74   :  { %1533 = vmatpush2.bf16.msra.mxu0 %v2974_v62  ;;  %v3069_v62 = vld [vmem:[#allocation8 + $0x544] ss:$16 sps:$4 sm:$0xff]  }
  0x75   :  { %1576 = vmatpush2.bf16.msra.mxu1 %v2975_v63  ;;  %1534 = vmatprep.subr.bf16.mxu0 %v2976_v0  ;;  %v3072_v63 = vld [vmem:[#allocation8 + $0x4c] ss:$16 sps:$4 sm:$0xff]   ;;  %v3067_v0 = vld [vmem:[#allocation8 + $0x540] ss:$16 sps:$4 sm:$0xff]  }
  0x76   :  { %1577 = vmatprep.subr.bf16.mxu1 %v2978_v1  ;;  %v3070_v1 = vld [vmem:[#allocation8 + $0x48] ss:$16 sps:$4 sm:$0xff]  }
  0x78   :  { %1535 = vmatpush2.bf16.msra.mxu0 %v2980_v2  ;;  %v3075_v2 = vld [vmem:[#allocation8 + $0x524] ss:$16 sps:$4 sm:$0xff]  }
  0x79   :  { %1578 = vmatpush2.bf16.msra.mxu1 %v2981_v3  ;;  %1590 = vmatprep.subr.bf16.mxu0 %v2990_v4  ;;  %v3078_v3 = vld [vmem:[#allocation8 + $0x2c] ss:$16 sps:$4 sm:$0xff]   ;;  %v3073_v4 = vld [vmem:[#allocation8 + $0x520] ss:$16 sps:$4 sm:$0xff]  }
  0x7a   :  { %1633 = vmatprep.subr.bf16.mxu1 %v2993_v5  ;;  %v3076_v5 = vld [vmem:[#allocation8 + $0x28] ss:$16 sps:$4 sm:$0xff]  }
  0x7b   :  { %1537 = vmatmul.mubr.bf16.vlgmr.msra.gmra.mxu0 %v3535_v6 }
  0x7c   :  { %1580 = vmatmul.mubr.bf16.vlgmr.msra.gmra.mxu1 %v3537_v7  ;;  %1591 = vmatpush1.bf16.msra.mxu0 %v2988_v8  ;;  %v3081_v8 = vld [vmem:[#allocation8 + $0x504] ss:$16 sps:$4 sm:$0xff]  }
  0x7d   :  { %1634 = vmatpush1.bf16.msra.mxu1 %v2991_v9  ;;  %1592 = vmatprep.subr.bf16.mxu0 %v2996_v10  ;;  %v3084_v9 = vld [vmem:[#allocation8 + $0xc] ss:$16 sps:$4 sm:$0xff]   ;;  %v3079_v10 = vld [vmem:[#allocation8 + $0x500] ss:$16 sps:$4 sm:$0xff]  }
  0x7e   :  { %1635 = vmatprep.subr.bf16.mxu1 %v2999_v11  ;;  %1665 = vmatprep.mubr.bf16.mxu1 %v3458_v16  ;;  %v3082_v11 = vld [vmem:[#allocation8 + $0x8] ss:$16 sps:$4 sm:$0xff]  }
  0x7f   :  { %1622 = vmatprep.mubr.bf16.mxu0 %v3542_v37 }
  0x80   :  { %1593 = vmatpush1.bf16.msra.mxu0 %v2994_v12  ;;  %v3090_v12 = vld [vmem:[#allocation8 + $0x1ec] ss:$16 sps:$4 sm:$0xff]  }
  0x81   :  { %1636 = vmatpush1.bf16.msra.mxu1 %v2997_v13  ;;  %1594 = vmatprep.subr.bf16.mxu0 %v3002_v14  ;;  %v3093_v13 = vld [vmem:[#allocation8 + $0x2ec] ss:$16 sps:$4 sm:$0xff]   ;;  %v3549_v14 = vld [vmem:[#allocation5 + $0x10] ss:$28 sps:$4 sm:$0xff]  }
  0x82   :  { %1637 = vmatprep.subr.bf16.mxu1 %v3005_v15  ;;  %v3088_v15 = vld [vmem:[#allocation8 + $0x1e8] ss:$16 sps:$4 sm:$0xff]  }
  0x84   :  { %1595 = vmatpush1.bf16.msra.mxu0 %v3000_v17  ;;  %v3091_v17 = vld [vmem:[#allocation8 + $0x2e8] ss:$16 sps:$4 sm:$0xff]  }
  0x85   :  { %1638 = vmatpush1.bf16.msra.mxu1 %v3003_v18  ;;  %1596 = vmatprep.subr.bf16.mxu0 %v3008_v19  ;;  %v3096_v18 = vld [vmem:[#allocation8 + $0x1cc] ss:$16 sps:$4 sm:$0xff]  }
  0x86   :  { %1639 = vmatprep.subr.bf16.mxu1 %v3011_v20  ;;  %v3099_v19 = vld [vmem:[#allocation8 + $0x2cc] ss:$16 sps:$4 sm:$0xff]   ;;  %v3094_v20 = vld [vmem:[#allocation8 + $0x1c8] ss:$16 sps:$4 sm:$0xff]  }
  0x88   :  { %1597 = vmatpush1.bf16.msra.mxu0 %v3006_v21  ;;  %v3097_v21 = vld [vmem:[#allocation8 + $0x2c8] ss:$16 sps:$4 sm:$0xff]  }
  0x89   :  { %1640 = vmatpush1.bf16.msra.mxu1 %v3009_v22  ;;  %1598 = vmatprep.subr.bf16.mxu0 %v3014_v23  ;;  %v3102_v22 = vld [vmem:[#allocation8 + $0x1ac] ss:$16 sps:$4 sm:$0xff]  }
  0x8a   :  { %1641 = vmatprep.subr.bf16.mxu1 %v3017_v24  ;;  %v3105_v23 = vld [vmem:[#allocation8 + $0x2ac] ss:$16 sps:$4 sm:$0xff]   ;;  %v3100_v24 = vld [vmem:[#allocation8 + $0x1a8] ss:$16 sps:$4 sm:$0xff]  }
  0x8c   :  { %1599 = vmatpush1.bf16.msra.mxu0 %v3012_v25  ;;  %v3103_v25 = vld [vmem:[#allocation8 + $0x2a8] ss:$16 sps:$4 sm:$0xff]  }
  0x8d   :  { %1642 = vmatpush1.bf16.msra.mxu1 %v3015_v26  ;;  %1600 = vmatprep.subr.bf16.mxu0 %v3020_v27  ;;  %v3108_v26 = vld [vmem:[#allocation8 + $0x18c] ss:$16 sps:$4 sm:$0xff]  }
  0x8e   :  { %1643 = vmatprep.subr.bf16.mxu1 %v3023_v28  ;;  %v3111_v27 = vld [vmem:[#allocation8 + $0x28c] ss:$16 sps:$4 sm:$0xff]   ;;  %v3106_v28 = vld [vmem:[#allocation8 + $0x188] ss:$16 sps:$4 sm:$0xff]  }
  0x90   :  { %1601 = vmatpush1.bf16.msra.mxu0 %v3018_v29  ;;  %v3109_v29 = vld [vmem:[#allocation8 + $0x288] ss:$16 sps:$4 sm:$0xff]  }
  0x91   :  { %1644 = vmatpush1.bf16.msra.mxu1 %v3021_v30  ;;  %1602 = vmatprep.subr.bf16.mxu0 %v3026_v31  ;;  %v3114_v30 = vld [vmem:[#allocation8 + $0x16c] ss:$16 sps:$4 sm:$0xff]  }
  0x92   :  { %1645 = vmatprep.subr.bf16.mxu1 %v3029_v32  ;;  %v3117_v31 = vld [vmem:[#allocation8 + $0x26c] ss:$16 sps:$4 sm:$0xff]   ;;  %v3112_v32 = vld [vmem:[#allocation8 + $0x168] ss:$16 sps:$4 sm:$0xff]  }
  0x94   :  { %1603 = vmatpush1.bf16.msra.mxu0 %v3024_v33  ;;  %v3120_v33 = vld [vmem:[#allocation8 + $0x14c] ss:$16 sps:$4 sm:$0xff]  }
  0x95   :  { %1646 = vmatpush1.bf16.msra.mxu1 %v3027_v34  ;;  %1604 = vmatprep.subr.bf16.mxu0 %v3032_v35  ;;  %v3123_v34 = vld [vmem:[#allocation8 + $0x24c] ss:$16 sps:$4 sm:$0xff]   ;;  %v3118_v35 = vld [vmem:[#allocation8 + $0x148] ss:$16 sps:$4 sm:$0xff]  }
  0x96   :  { %1647 = vmatprep.subr.bf16.mxu1 %v3035_v36  ;;  %v3121_v36 = vld [vmem:[#allocation8 + $0x248] ss:$16 sps:$4 sm:$0xff]  }
  0x98   :  { %1605 = vmatpush1.bf16.msra.mxu0 %v3030_v38  ;;  %v3126_v38 = vld [vmem:[#allocation8 + $0x12c] ss:$16 sps:$4 sm:$0xff]  }
  0x99   :  { %1648 = vmatpush1.bf16.msra.mxu1 %v3033_v39  ;;  %1606 = vmatprep.subr.bf16.mxu0 %v3038_v40  ;;  %v3129_v39 = vld [vmem:[#allocation8 + $0x22c] ss:$16 sps:$4 sm:$0xff]   ;;  %v3124_v40 = vld [vmem:[#allocation8 + $0x128] ss:$16 sps:$4 sm:$0xff]  }
  0x9a   :  { %1676 = vmatprep.subr.bf16.mxu1 %v3042_v41  ;;  %v3127_v41 = vld [vmem:[#allocation8 + $0x228] ss:$16 sps:$4 sm:$0xff]  }
  0x9c   :  { %1666 = vmatmul.mubr.bf16.vlgmr.msra.gmra.mxu1 %v3545_v43  ;;  %1607 = vmatpush2.bf16.msra.mxu0 %v3036_v42  ;;  %v3132_v42 = vld [vmem:[#allocation8 + $0x10c] ss:$16 sps:$4 sm:$0xff]  }
  0x9d   :  { %1677 = vmatpush1.bf16.msra.mxu1 %v3040_v44  ;;  %1608 = vmatprep.subr.bf16.mxu0 %v3045_v45  ;;  %v3135_v44 = vld [vmem:[#allocation8 + $0x20c] ss:$16 sps:$4 sm:$0xff]   ;;  %v3130_v45 = vld [vmem:[#allocation8 + $0x108] ss:$16 sps:$4 sm:$0xff]  }
  0x9e   :  { %1678 = vmatprep.subr.bf16.mxu1 %v3048_v46  ;;  %1708 = vmatprep.mubr.bf16.mxu1 %v3529_v51  ;;  %v3064_v51 = vld [vmem:[#allocation8 + $0x68] ss:$16 sps:$4 sm:$0xff]  }
  0x9f   :  { %v3133_v46 = vld [vmem:[#allocation8 + $0x208] ss:$16 sps:$4 sm:$0xff]  }
  0xa0   :  { %1609 = vmatpush2.bf16.msra.mxu0 %v3043_v47  ;;  %v3138_v47 = vld [vmem:[#allocation8 + $0x3ec] ss:$16 sps:$4 sm:$0xff]  }
  0xa1   :  { %1679 = vmatpush1.bf16.msra.mxu1 %v3046_v48  ;;  %1610 = vmatprep.subr.bf16.mxu0 %v3051_v49  ;;  %v3141_v48 = vld [vmem:[#allocation8 + $0x4ec] ss:$16 sps:$4 sm:$0xff]   ;;  %v3136_v49 = vld [vmem:[#allocation8 + $0x3e8] ss:$16 sps:$4 sm:$0xff]  }
  0xa2   :  { %1680 = vmatprep.subr.bf16.mxu1 %v3054_v50  ;;  %v3139_v50 = vld [vmem:[#allocation8 + $0x4e8] ss:$16 sps:$4 sm:$0xff]  }
  0xa4   :  { %1611 = vmatpush2.bf16.msra.mxu0 %v3049_v52  ;;  %v3144_v52 = vld [vmem:[#allocation8 + $0x3cc] ss:$16 sps:$4 sm:$0xff]  }
  0xa5   :  { %1681 = vmatpush1.bf16.msra.mxu1 %v3052_v54  ;;  %1612 = vmatprep.subr.bf16.mxu0 %v3057_v55  ;;  %v3147_v54 = vld [vmem:[#allocation8 + $0x4cc] ss:$16 sps:$4 sm:$0xff]   ;;  %v3142_v55 = vld [vmem:[#allocation8 + $0x3c8] ss:$16 sps:$4 sm:$0xff]  }
  0xa6   :  { %1682 = vmatprep.subr.bf16.mxu1 %v3060_v56  ;;  %v3145_v56 = vld [vmem:[#allocation8 + $0x4c8] ss:$16 sps:$4 sm:$0xff]  }
  0xa8   :  { %1613 = vmatpush2.bf16.msra.mxu0 %v3055_v57  ;;  %v3150_v57 = vld [vmem:[#allocation8 + $0x3ac] ss:$16 sps:$4 sm:$0xff]  }
  0xa9   :  { %1683 = vmatpush1.bf16.msra.mxu1 %v3058_v58  ;;  %1614 = vmatprep.subr.bf16.mxu0 %v3063_v59  ;;  %v3153_v58 = vld [vmem:[#allocation8 + $0x4ac] ss:$16 sps:$4 sm:$0xff]   ;;  %v3148_v59 = vld [vmem:[#allocation8 + $0x3a8] ss:$16 sps:$4 sm:$0xff]  }
  0xaa   :  { %1684 = vmatprep.subr.bf16.mxu1 %v3066_v60  ;;  %v3151_v60 = vld [vmem:[#allocation8 + $0x4a8] ss:$16 sps:$4 sm:$0xff]  }
  0xac   :  { %1615 = vmatpush2.bf16.msra.mxu0 %v3061_v61  ;;  %v3156_v61 = vld [vmem:[#allocation8 + $0x38c] ss:$16 sps:$4 sm:$0xff]  }
  0xad   :  { %1685 = vmatpush1.bf16.msra.mxu1 %v3064_v51  ;;  %1616 = vmatprep.subr.bf16.mxu0 %v3069_v62  ;;  %v3159_v51 = vld [vmem:[#allocation8 + $0x48c] ss:$16 sps:$4 sm:$0xff]   ;;  %v3154_v62 = vld [vmem:[#allocation8 + $0x388] ss:$16 sps:$4 sm:$0xff]  }
  0xae   :  { %1686 = vmatprep.subr.bf16.mxu1 %v3072_v63  ;;  %v3162_v63 = vld [vmem:[#allocation8 + $0x36c] ss:$16 sps:$4 sm:$0xff]  }
  0xb0   :  { %1617 = vmatpush2.bf16.msra.mxu0 %v3067_v0  ;;  %v3165_v0 = vld [vmem:[#allocation8 + $0x46c] ss:$16 sps:$4 sm:$0xff]  }
  0xb1   :  { %1687 = vmatpush1.bf16.msra.mxu1 %v3070_v1  ;;  %1618 = vmatprep.subr.bf16.mxu0 %v3075_v2  ;;  %v3160_v1 = vld [vmem:[#allocation8 + $0x368] ss:$16 sps:$4 sm:$0xff]  }
  0xb2   :  { %1688 = vmatprep.subr.bf16.mxu1 %v3078_v3  ;;  %v3163_v2 = vld [vmem:[#allocation8 + $0x468] ss:$16 sps:$4 sm:$0xff]   ;;  %v3168_v3 = vld [vmem:[#allocation8 + $0x34c] ss:$16 sps:$4 sm:$0xff]  }
  0xb4   :  { %1619 = vmatpush2.bf16.msra.mxu0 %v3073_v4  ;;  %v3171_v4 = vld [vmem:[#allocation8 + $0x44c] ss:$16 sps:$4 sm:$0xff]  }
  0xb5   :  { %1689 = vmatpush1.bf16.msra.mxu1 %v3076_v5  ;;  %1620 = vmatprep.subr.bf16.mxu0 %v3081_v8  ;;  %v3169_v5 = vld [vmem:[#allocation8 + $0x448] ss:$16 sps:$4 sm:$0xff]   ;;  %v3174_v8 = vld [vmem:[#allocation8 + $0x32c] ss:$16 sps:$4 sm:$0xff]  }
  0xb6   :  { %1690 = vmatprep.subr.bf16.mxu1 %v3084_v9  ;;  %v3177_v9 = vld [vmem:[#allocation8 + $0x42c] ss:$16 sps:$4 sm:$0xff]  }
  0xb8   :  { %1621 = vmatpush2.bf16.msra.mxu0 %v3079_v10  ;;  %v3172_v10 = vld [vmem:[#allocation8 + $0x328] ss:$16 sps:$4 sm:$0xff]  }
  0xb9   :  { %1691 = vmatpush1.bf16.msra.mxu1 %v3082_v11  ;;  %1719 = vmatprep.subr.bf16.mxu0 %v3093_v13  ;;  %v3175_v11 = vld [vmem:[#allocation8 + $0x428] ss:$16 sps:$4 sm:$0xff]   ;;  %v3183_v13 = vld [vmem:[#allocation8 + $0x40c] ss:$16 sps:$4 sm:$0xff]  }
  0xba   :  { %1692 = vmatprep.subr.bf16.mxu1 %v3090_v12  ;;  %v3180_v12 = vld [vmem:[#allocation8 + $0x30c] ss:$16 sps:$4 sm:$0xff]  }
  0xbb   :  { %1623 = vmatmul.mubr.bf16.vlgmr.msra.gmra.mxu0 %v3549_v14 }
  0xbc   :  { %1720 = vmatpush1.bf16.msra.mxu0 %v3091_v17  ;;  %1751 = vmatprep.mubr.bf16.mxu0 %v3531_v53  ;;  %v3115_v53 = vld [vmem:[#allocation8 + $0x268] ss:$16 sps:$4 sm:$0xff]  }
  0xbd   :  { %1693 = vmatpush2.bf16.msra.mxu1 %v3088_v15  ;;  %1721 = vmatprep.subr.bf16.mxu0 %v3099_v19  ;;  %v3178_v15 = vld [vmem:[#allocation8 + $0x308] ss:$16 sps:$4 sm:$0xff]   ;;  %v3189_v19 = vld [vmem:[#allocation8 + $0x6ec] ss:$16 sps:$4 sm:$0xff]  }
  0xbe   :  { %1694 = vmatprep.subr.bf16.mxu1 %v3096_v18  ;;  %v3181_v17 = vld [vmem:[#allocation8 + $0x408] ss:$16 sps:$4 sm:$0xff]   ;;  %v3186_v18 = vld [vmem:[#allocation8 + $0x5ec] ss:$16 sps:$4 sm:$0xff]  }
  0xc0   :  { %1722 = vmatpush1.bf16.msra.mxu0 %v3097_v21  ;;  %v3187_v21 = vld [vmem:[#allocation8 + $0x6e8] ss:$16 sps:$4 sm:$0xff]  }
  0xc1   :  { %1695 = vmatpush2.bf16.msra.mxu1 %v3094_v20  ;;  %1723 = vmatprep.subr.bf16.mxu0 %v3105_v23  ;;  %v3184_v20 = vld [vmem:[#allocation8 + $0x5e8] ss:$16 sps:$4 sm:$0xff]   ;;  %v3195_v23 = vld [vmem:[#allocation8 + $0x6cc] ss:$16 sps:$4 sm:$0xff]  }
  0xc2   :  { %1696 = vmatprep.subr.bf16.mxu1 %v3102_v22  ;;  %v3192_v22 = vld [vmem:[#allocation8 + $0x5cc] ss:$16 sps:$4 sm:$0xff]  }
  0xc4   :  { %1724 = vmatpush1.bf16.msra.mxu0 %v3103_v25  ;;  %v3193_v25 = vld [vmem:[#allocation8 + $0x6c8] ss:$16 sps:$4 sm:$0xff]  }
  0xc5   :  { %1697 = vmatpush2.bf16.msra.mxu1 %v3100_v24  ;;  %1725 = vmatprep.subr.bf16.mxu0 %v3111_v27  ;;  %v3190_v24 = vld [vmem:[#allocation8 + $0x5c8] ss:$16 sps:$4 sm:$0xff]   ;;  %v3201_v27 = vld [vmem:[#allocation8 + $0x6ac] ss:$16 sps:$4 sm:$0xff]  }
  0xc6   :  { %1698 = vmatprep.subr.bf16.mxu1 %v3108_v26  ;;  %v3198_v26 = vld [vmem:[#allocation8 + $0x5ac] ss:$16 sps:$4 sm:$0xff]  }
  0xc8   :  { %1726 = vmatpush1.bf16.msra.mxu0 %v3109_v29  ;;  %v3199_v29 = vld [vmem:[#allocation8 + $0x6a8] ss:$16 sps:$4 sm:$0xff]  }
  0xc9   :  { %1699 = vmatpush2.bf16.msra.mxu1 %v3106_v28  ;;  %1727 = vmatprep.subr.bf16.mxu0 %v3117_v31  ;;  %v3196_v28 = vld [vmem:[#allocation8 + $0x5a8] ss:$16 sps:$4 sm:$0xff]   ;;  %v3207_v31 = vld [vmem:[#allocation8 + $0x68c] ss:$16 sps:$4 sm:$0xff]  }
  0xca   :  { %1700 = vmatprep.subr.bf16.mxu1 %v3114_v30  ;;  %v3204_v30 = vld [vmem:[#allocation8 + $0x58c] ss:$16 sps:$4 sm:$0xff]  }
  0xcc   :  { %1728 = vmatpush1.bf16.msra.mxu0 %v3115_v53  ;;  %v3210_v53 = vld [vmem:[#allocation8 + $0x56c] ss:$16 sps:$4 sm:$0xff]  }
  0xcd   :  { %1701 = vmatpush2.bf16.msra.mxu1 %v3112_v32  ;;  %1729 = vmatprep.subr.bf16.mxu0 %v3123_v34  ;;  %v3205_v32 = vld [vmem:[#allocation8 + $0x688] ss:$16 sps:$4 sm:$0xff]  }
  0xce   :  { %1702 = vmatprep.subr.bf16.mxu1 %v3120_v33  ;;  %v3213_v33 = vld [vmem:[#allocation8 + $0x66c] ss:$16 sps:$4 sm:$0xff]   ;;  %v3208_v34 = vld [vmem:[#allocation8 + $0x568] ss:$16 sps:$4 sm:$0xff]  }
  0xd0   :  { %1730 = vmatpush1.bf16.msra.mxu0 %v3121_v36  ;;  %v3219_v36 = vld [vmem:[#allocation8 + $0x64c] ss:$16 sps:$4 sm:$0xff]  }
  0xd1   :  { %1703 = vmatpush2.bf16.msra.mxu1 %v3118_v35  ;;  %1731 = vmatprep.subr.bf16.mxu0 %v3129_v39  ;;  %v3216_v35 = vld [vmem:[#allocation8 + $0x54c] ss:$16 sps:$4 sm:$0xff]   ;;  %v3217_v39 = vld [vmem:[#allocation8 + $0x648] ss:$16 sps:$4 sm:$0xff]  }
  0xd2   :  { %1704 = vmatprep.subr.bf16.mxu1 %v3126_v38  ;;  %v3214_v38 = vld [vmem:[#allocation8 + $0x548] ss:$16 sps:$4 sm:$0xff]  }
  0xd4   :  { %1732 = vmatpush1.bf16.msra.mxu0 %v3127_v41  ;;  %v3225_v41 = vld [vmem:[#allocation8 + $0x62c] ss:$16 sps:$4 sm:$0xff]  }
  0xd5   :  { %1705 = vmatpush2.bf16.msra.mxu1 %v3124_v40  ;;  %1733 = vmatprep.subr.bf16.mxu0 %v3135_v44  ;;  %v3222_v40 = vld [vmem:[#allocation8 + $0x52c] ss:$16 sps:$4 sm:$0xff]   ;;  %v3223_v44 = vld [vmem:[#allocation8 + $0x628] ss:$16 sps:$4 sm:$0xff]  }
  0xd6   :  { %1706 = vmatprep.subr.bf16.mxu1 %v3132_v42  ;;  %v3220_v42 = vld [vmem:[#allocation8 + $0x528] ss:$16 sps:$4 sm:$0xff]  }
  0xd8   :  { %1734 = vmatpush1.bf16.msra.mxu0 %v3133_v46  ;;  %v3231_v46 = vld [vmem:[#allocation8 + $0x60c] ss:$16 sps:$4 sm:$0xff]  }
  0xd9   :  { %1707 = vmatpush2.bf16.msra.mxu1 %v3130_v45  ;;  %1735 = vmatprep.subr.bf16.mxu0 %v3138_v47  ;;  %v3228_v45 = vld [vmem:[#allocation8 + $0x50c] ss:$16 sps:$4 sm:$0xff]   ;;  %v3226_v47 = vld [vmem:[#allocation8 + $0x508] ss:$16 sps:$4 sm:$0xff]  }
  0xda   :  { %1762 = vmatprep.subr.bf16.mxu1 %v3141_v48  ;;  %v3229_v48 = vld [vmem:[#allocation8 + $0x608] ss:$16 sps:$4 sm:$0xff]  }
  0xdc   :  { %1709 = vmatmul.mubr.bf16.vlgmr.msra.gmra.mxu1 %v3535_v6  ;;  %1736 = vmatpush2.bf16.msra.mxu0 %v3136_v49  ;;  %v3157_v6 = vld [vmem:[#allocation8 + $0x488] ss:$16 sps:$4 sm:$0xff]   ;;  %v3234_v49 = vld [vmem:[#allocation10 + $0x74] ss:$8 sps:$4 sm:$0xff]  }
  0xdd   :  { %1763 = vmatpush1.bf16.msra.mxu1 %v3139_v50  ;;  %1737 = vmatprep.subr.bf16.mxu0 %v3144_v52  ;;  %v3232_v50 = vld [vmem:[#allocation10 + $0x70] ss:$8 sps:$4 sm:$0xff]   ;;  %v3237_v52 = vld [vmem:[#allocation10 + $0x64] ss:$8 sps:$4 sm:$0xff]  }
  0xde   :  { %1764 = vmatprep.subr.bf16.mxu1 %v3147_v54  ;;  %1794 = vmatprep.mubr.bf16.mxu1 %v3542_v37  ;;  %v3166_v37 = vld [vmem:[#allocation8 + $0x348] ss:$16 sps:$4 sm:$0xff]  }
  0xdf   :  { %v3235_v54 = vld [vmem:[#allocation10 + $0x60] ss:$8 sps:$4 sm:$0xff]  }
  0xe0   :  { %1738 = vmatpush2.bf16.msra.mxu0 %v3142_v55  ;;  %v3240_v55 = vld [vmem:[#allocation10 + $0x54] ss:$8 sps:$4 sm:$0xff]  }
  0xe1   :  { %1765 = vmatpush1.bf16.msra.mxu1 %v3145_v56  ;;  %1739 = vmatprep.subr.bf16.mxu0 %v3150_v57  ;;  %v3238_v56 = vld [vmem:[#allocation10 + $0x50] ss:$8 sps:$4 sm:$0xff]   ;;  %v3243_v57 = vld [vmem:[#allocation10 + $0x44] ss:$8 sps:$4 sm:$0xff]  }
  0xe2   :  { %1766 = vmatprep.subr.bf16.mxu1 %v3153_v58  ;;  %v3280_v58 = vld [vmem:[#allocation10 + $0x170] ss:$8 sps:$4 sm:$0xff]  }
  0xe4   :  { %1740 = vmatpush2.bf16.msra.mxu0 %v3148_v59  ;;  %v3282_v59 = vld [vmem:[#allocation10 + $0x174] ss:$8 sps:$4 sm:$0xff]  }
  0xe5   :  { %1767 = vmatpush1.bf16.msra.mxu1 %v3151_v60  ;;  %1741 = vmatprep.subr.bf16.mxu0 %v3156_v61  ;;  %v3285_v60 = vld [vmem:[#allocation10 + $0x164] ss:$8 sps:$4 sm:$0xff]   ;;  %v3241_v61 = vld [vmem:[#allocation10 + $0x40] ss:$8 sps:$4 sm:$0xff]  }
  0xe6   :  { %1768 = vmatprep.subr.bf16.mxu1 %v3159_v51  ;;  %v3246_v51 = vld [vmem:[#allocation10 + $0x34] ss:$8 sps:$4 sm:$0xff]  }
  0xe8   :  { %1742 = vmatpush2.bf16.msra.mxu0 %v3154_v62  ;;  %v3244_v62 = vld [vmem:[#allocation10 + $0x30] ss:$8 sps:$4 sm:$0xff]  }
  0xe9   :  { %1769 = vmatpush1.bf16.msra.mxu1 %v3157_v6  ;;  %1743 = vmatprep.subr.bf16.mxu0 %v3162_v63  ;;  %v3249_v6 = vld [vmem:[#allocation10 + $0x24] ss:$8 sps:$4 sm:$0xff]   ;;  %v3286_v63 = vld [vmem:[#allocation10 + $0x150] ss:$8 sps:$4 sm:$0xff]  }
  0xea   :  { %1770 = vmatprep.subr.bf16.mxu1 %v3165_v0  ;;  %v3291_v0 = vld [vmem:[#allocation10 + $0x144] ss:$8 sps:$4 sm:$0xff]  }
  0xec   :  { %1744 = vmatpush2.bf16.msra.mxu0 %v3160_v1  ;;  %v3247_v1 = vld [vmem:[#allocation10 + $0x20] ss:$8 sps:$4 sm:$0xff]  }
  0xed   :  { %1771 = vmatpush1.bf16.msra.mxu1 %v3163_v2  ;;  %1745 = vmatprep.subr.bf16.mxu0 %v3168_v3  ;;  %v3252_v2 = vld [vmem:[#allocation10 + $0x14] ss:$8 sps:$4 sm:$0xff]   ;;  %v3289_v3 = vld [vmem:[#allocation10 + $0x140] ss:$8 sps:$4 sm:$0xff]  }
  0xee   :  { %1772 = vmatprep.subr.bf16.mxu1 %v3171_v4  ;;  %v3250_v4 = vld [vmem:[#allocation10 + $0x10] ss:$8 sps:$4 sm:$0xff]  }
  0xf0   :  { %1746 = vmatpush2.bf16.msra.mxu0 %v3166_v37  ;;  %v3255_v37 = vld [vmem:[#allocation10 + $0x4] ss:$8 sps:$4 sm:$0xff]  }
  0xf1   :  { %1773 = vmatpush1.bf16.msra.mxu1 %v3169_v5  ;;  %1747 = vmatprep.subr.bf16.mxu0 %v3174_v8  ;;  %v3253_v5 = vld [vmem:[#allocation10] ss:$8 sps:$4 sm:$0xff]   ;;  %v3258_v8 = vld [vmem:[#allocation10 + $0xf4] ss:$8 sps:$4 sm:$0xff]  }
  0xf2   :  { %1774 = vmatprep.subr.bf16.mxu1 %v3177_v9  ;;  %v3256_v9 = vld [vmem:[#allocation10 + $0xf0] ss:$8 sps:$4 sm:$0xff]  }
  0xf4   :  { %1748 = vmatpush2.bf16.msra.mxu0 %v3172_v10  ;;  %v3261_v10 = vld [vmem:[#allocation10 + $0xe4] ss:$8 sps:$4 sm:$0xff]  }
  0xf5   :  { %1775 = vmatpush1.bf16.msra.mxu1 %v3175_v11  ;;  %1749 = vmatprep.subr.bf16.mxu0 %v3180_v12  ;;  %v3294_v11 = vld [vmem:[#allocation10 + $0x134] ss:$8 sps:$4 sm:$0xff]   ;;  %v3259_v12 = vld [vmem:[#allocation10 + $0xe0] ss:$8 sps:$4 sm:$0xff]  }
  0xf6   :  { %1776 = vmatprep.subr.bf16.mxu1 %v3183_v13  ;;  %v3292_v13 = vld [vmem:[#allocation10 + $0x130] ss:$8 sps:$4 sm:$0xff]  }
  0xf8   :  { %1750 = vmatpush2.bf16.msra.mxu0 %v3178_v15  ;;  %v3264_v15 = vld [vmem:[#allocation10 + $0xd4] ss:$8 sps:$4 sm:$0xff]  }
  0xf9   :  { %1777 = vmatpush1.bf16.msra.mxu1 %v3181_v17  ;;  %1805 = vmatprep.subr.bf16.mxu0 %v3189_v19  ;;  %v3297_v17 = vld [vmem:[#allocation10 + $0x124] ss:$8 sps:$4 sm:$0xff]   ;;  %v3295_v19 = vld [vmem:[#allocation10 + $0x120] ss:$8 sps:$4 sm:$0xff]  }
  0xfa   :  { %1778 = vmatprep.subr.bf16.mxu1 %v3186_v18  ;;  %v3262_v18 = vld [vmem:[#allocation10 + $0xd0] ss:$8 sps:$4 sm:$0xff]  }
  0xfb   :  { %1752 = vmatmul.mubr.bf16.vlgmr.msra.gmra.mxu0 %v3537_v7  ;;  %v3202_v7 = vld [vmem:[#allocation8 + $0x588] ss:$16 sps:$4 sm:$0xff]  }
  0xfc   :  { %1806 = vmatpush1.bf16.msra.mxu0 %v3187_v21  ;;  %1837 = vmatprep.mubr.bf16.mxu0 %v3458_v16  ;;  %v3211_v16 = vld [vmem:[#allocation8 + $0x668] ss:$16 sps:$4 sm:$0xff]  }
  0xfd   :  { %1779 = vmatpush2.bf16.msra.mxu1 %v3184_v20  ;;  %1807 = vmatprep.subr.bf16.mxu0 %v3195_v23  ;;  %v3267_v20 = vld [vmem:[#allocation10 + $0xc4] ss:$8 sps:$4 sm:$0xff]   ;;  %v3298_v21 = vld [vmem:[#allocation10 + $0x110] ss:$8 sps:$4 sm:$0xff]  }
  0xfe   :  { %1780 = vmatprep.subr.bf16.mxu1 %v3192_v22  ;;  %v3300_v22 = vld [vmem:[#allocation10 + $0x114] ss:$8 sps:$4 sm:$0xff]   ;;  %v3303_v23 = vld [vmem:[#allocation10 + $0x104] ss:$8 sps:$4 sm:$0xff]  }
 0x100   :  { %1808 = vmatpush1.bf16.msra.mxu0 %v3193_v25  ;;  %v3270_v25 = vld [vmem:[#allocation10 + $0xb4] ss:$8 sps:$4 sm:$0xff]  }
 0x101   :  { %1781 = vmatpush2.bf16.msra.mxu1 %v3190_v24  ;;  %1809 = vmatprep.subr.bf16.mxu0 %v3201_v27  ;;  %v3265_v24 = vld [vmem:[#allocation10 + $0xc0] ss:$8 sps:$4 sm:$0xff]   ;;  %v3306_v27 = vld [vmem:[#allocation10 + $0x1f4] ss:$8 sps:$4 sm:$0xff]  }
 0x102   :  { %1782 = vmatprep.subr.bf16.mxu1 %v3198_v26  ;;  %v3301_v26 = vld [vmem:[#allocation10 + $0x100] ss:$8 sps:$4 sm:$0xff]  }
 0x104   :  { %1810 = vmatpush1.bf16.msra.mxu0 %v3199_v29  ;;  %v3273_v29 = vld [vmem:[#allocation10 + $0xa4] ss:$8 sps:$4 sm:$0xff]  }
 0x105   :  { %1783 = vmatpush2.bf16.msra.mxu1 %v3196_v28  ;;  %1811 = vmatprep.subr.bf16.mxu0 %v3207_v31  ;;  %v3268_v28 = vld [vmem:[#allocation10 + $0xb0] ss:$8 sps:$4 sm:$0xff]   ;;  %v3309_v31 = vld [vmem:[#allocation10 + $0x1e4] ss:$8 sps:$4 sm:$0xff]  }
 0x106   :  { %1784 = vmatprep.subr.bf16.mxu1 %v3204_v30  ;;  %v3304_v30 = vld [vmem:[#allocation10 + $0x1f0] ss:$8 sps:$4 sm:$0xff]  }
 0x108   :  { %1812 = vmatpush1.bf16.msra.mxu0 %v3205_v32  ;;  %v3276_v32 = vld [vmem:[#allocation10 + $0x94] ss:$8 sps:$4 sm:$0xff]  }
 0x109   :  { %1785 = vmatpush2.bf16.msra.mxu1 %v3202_v7  ;;  %1813 = vmatprep.subr.bf16.mxu0 %v3213_v33  ;;  %v3271_v7 = vld [vmem:[#allocation10 + $0xa0] ss:$8 sps:$4 sm:$0xff]   ;;  %v3312_v33 = vld [vmem:[#allocation10 + $0x1d4] ss:$8 sps:$4 sm:$0xff]  }
 0x10a   :  { %1786 = vmatprep.subr.bf16.mxu1 %v3210_v53  ;;  %v3307_v53 = vld [vmem:[#allocation10 + $0x1e0] ss:$8 sps:$4 sm:$0xff]  }
 0x10c   :  { %1814 = vmatpush1.bf16.msra.mxu0 %v3211_v16  ;;  %v3279_v16 = vld [vmem:[#allocation10 + $0x84] ss:$8 sps:$4 sm:$0xff]  }
 0x10d   :  { %1787 = vmatpush2.bf16.msra.mxu1 %v3208_v34  ;;  %1815 = vmatprep.subr.bf16.mxu0 %v3219_v36  ;;  %v3274_v34 = vld [vmem:[#allocation10 + $0x90] ss:$8 sps:$4 sm:$0xff]   ;;  %v3315_v36 = vld [vmem:[#allocation10 + $0x1c4] ss:$8 sps:$4 sm:$0xff]  }
 0x10e   :  { %1788 = vmatprep.subr.bf16.mxu1 %v3216_v35  ;;  %v3310_v35 = vld [vmem:[#allocation10 + $0x1d0] ss:$8 sps:$4 sm:$0xff]  }
 0x110   :  { %1816 = vmatpush1.bf16.msra.mxu0 %v3217_v39  ;;  %v3313_v39 = vld [vmem:[#allocation10 + $0x1c0] ss:$8 sps:$4 sm:$0xff]  }
 0x111   :  { %1789 = vmatpush2.bf16.msra.mxu1 %v3214_v38  ;;  %1817 = vmatprep.subr.bf16.mxu0 %v3225_v41  ;;  %v3277_v38 = vld [vmem:[#allocation10 + $0x80] ss:$8 sps:$4 sm:$0xff]   ;;  %v3316_v41 = vld [vmem:[#allocation10 + $0x1b0] ss:$8 sps:$4 sm:$0xff]  }
 0x112   :  { %1790 = vmatprep.subr.bf16.mxu1 %v3222_v40  ;;  %v3318_v40 = vld [vmem:[#allocation10 + $0x1b4] ss:$8 sps:$4 sm:$0xff]  }
 0x114   :  { %1818 = vmatpush1.bf16.msra.mxu0 %v3223_v44  ;;  %v3319_v44 = vld [vmem:[#allocation10 + $0x1a0] ss:$8 sps:$4 sm:$0xff]  }
 0x115   :  { %1791 = vmatpush2.bf16.msra.mxu1 %v3220_v42  ;;  %1819 = vmatprep.subr.bf16.mxu0 %v3231_v46  ;;  %v3321_v42 = vld [vmem:[#allocation10 + $0x1a4] ss:$8 sps:$4 sm:$0xff]   ;;  %v3322_v46 = vld [vmem:[#allocation10 + $0x190] ss:$8 sps:$4 sm:$0xff]  }
 0x116   :  { %1792 = vmatprep.subr.bf16.mxu1 %v3228_v45  ;;  %v3324_v45 = vld [vmem:[#allocation10 + $0x194] ss:$8 sps:$4 sm:$0xff]  }
 0x118   :  { %1820 = vmatpush1.bf16.msra.mxu0 %v3229_v48  ;;  %v3327_v48 = vld [vmem:[#allocation10 + $0x184] ss:$8 sps:$4 sm:$0xff]  }
 0x119   :  { %1793 = vmatpush2.bf16.msra.mxu1 %v3226_v47  ;;  %2272 = vmatprep.subr.bf16.mxu0 %v3234_v49  ;;  %v3325_v47 = vld [vmem:[#allocation10 + $0x180] ss:$8 sps:$4 sm:$0xff]   ;;  %v328_v49 = vlaneseq }
 0x11a   :  { %2315 = vmatprep.subr.bf16.mxu1 %v3282_v59 }
 0x11b   :  { %1838 = vmatmul.mubr.bf16.vlgmr.msra.gmra.mxu0 %v3545_v43  ;;  %v3288_v43 = vld [vmem:[#allocation10 + $0x154] ss:$8 sps:$4 sm:$0xff]  }
 0x11c   :  { %1795 = vmatmul.mubr.bf16.vlgmr.msra.gmra.mxu1 %v3549_v14  ;;  %2273 = vmatpush1.bf16.msra.mxu0 %v3232_v50  ;;  %v3283_v14 = vld [vmem:[#allocation10 + $0x160] ss:$8 sps:$4 sm:$0xff]  }
 0x11d   :  { %2274 = vmatprep.subr.bf16.mxu0 %v3237_v52  ;;  %2316 = vmatpush1.bf16.msra.mxu1 %v3280_v58  ;;  %v3559_v52 = vshrl.u32 %v328_v49, 7  ;;  %v326_v58 = vld [vmem:[%s3601_s3] sm:$0xf] }
 0x11e   :  { %2317 = vmatprep.subr.bf16.mxu1 %v3285_v60 }
 0x120   :  { %2275 = vmatpush1.bf16.msra.mxu0 %v3235_v54 }
 0x121   :  { %2276 = vmatprep.subr.bf16.mxu0 %v3240_v55  ;;  %2318 = vmatpush1.bf16.msra.mxu1 %v3283_v14 }
 0x122   :  { %2319 = vmatprep.subr.bf16.mxu1 %v3288_v43 }
 0x124   :  { %2277 = vmatpush1.bf16.msra.mxu0 %v3238_v56  ;;  %v330_v56 = vsub.s32 0, %v3559_v52 }
 0x125   :  { %2278 = vmatprep.subr.bf16.mxu0 %v3243_v57  ;;  %2320 = vmatpush1.bf16.msra.mxu1 %v3286_v63  ;;  %v334_v57 = vsub.s32 1, %v3559_v52 }
 0x126   :  { %2321 = vmatprep.subr.bf16.mxu1 %v3291_v0 }
 0x128   :  { %2279 = vmatpush1.bf16.msra.mxu0 %v3241_v61  ;;  %v331_v61 = vrot.slane %v326_v58, %v330_v56 }
 0x129   :  { %2280 = vmatprep.subr.bf16.mxu0 %v3246_v51  ;;  %2322 = vmatpush1.bf16.msra.mxu1 %v3289_v3  ;;  %v335_v51 = vrot.slane %v326_v58, %v334_v57 }
 0x12a   :  { %2323 = vmatprep.subr.bf16.mxu1 %v3294_v11 }
 0x12c   :  { %2281 = vmatpush1.bf16.msra.mxu0 %v3244_v62 }
 0x12d   :  { %2282 = vmatprep.subr.bf16.mxu0 %v3249_v6  ;;  %2324 = vmatpush1.bf16.msra.mxu1 %v3292_v13 }
 0x12e   :  { %2325 = vmatprep.subr.bf16.mxu1 %v3297_v17 }
 0x130   :  { %2283 = vmatpush1.bf16.msra.mxu0 %v3247_v1 }
 0x131   :  { %2284 = vmatprep.subr.bf16.mxu0 %v3252_v2  ;;  %2326 = vmatpush1.bf16.msra.mxu1 %v3295_v19 }
 0x132   :  { %2327 = vmatprep.subr.bf16.mxu1 %v3300_v22 }
 0x134   :  { %2285 = vmatpush1.bf16.msra.mxu0 %v3250_v4 }
 0x135   :  { %2286 = vmatprep.subr.bf16.mxu0 %v3255_v37  ;;  %2328 = vmatpush1.bf16.msra.mxu1 %v3298_v21 }
 0x136   :  { %2329 = vmatprep.subr.bf16.mxu1 %v3303_v23 }
 0x138   :  { %2287 = vmatpush1.bf16.msra.mxu0 %v3253_v5 }
 0x139   :  { %2288 = vmatprep.subr.bf16.mxu0 %v3258_v8  ;;  %2330 = vmatpush1.bf16.msra.mxu1 %v3301_v26 }
 0x13a   :  { %2331 = vmatprep.subr.bf16.mxu1 %v3306_v27 }
 0x13b   :  { %v1538_v54 = vpop.f32.mrf.mxu0 }
 0x13c   :  { %2289 = vmatpush2.bf16.msra.mxu0 %v3256_v9  ;;  %v1581_v50 = vpop.f32.mrf.mxu1  ;;  %v1539_v62 = vadd.f32 %v1538_v54, %v331_v61 }
 0x13d   :  { %2290 = vmatprep.subr.bf16.mxu0 %v3261_v10  ;;  %2332 = vmatpush2.bf16.msra.mxu1 %v3304_v30  ;;  %v1540_v59 = vpop.f32.mrf.mxu0 }
 0x13e   :  { %2333 = vmatprep.subr.bf16.mxu1 %v3309_v31  ;;  %v1583_v55 = vpop.f32.mrf.mxu1  ;;  %v1541_v6 = vadd.f32 %v1540_v59, %v335_v51  ;;  %v1582_v3 = vadd.f32 %v1581_v50, %v1539_v62 }
 0x13f   :  { %v1542_v14 = vpop.f32.mrf.mxu0 }
 0x140   :  { %2291 = vmatpush2.bf16.msra.mxu0 %v3259_v12  ;;  %v1585_v60 = vpop.f32.mrf.mxu1  ;;  %v1543_v1 = vadd.f32 %v1542_v14, %v331_v61  ;;  %v1584_v4 = vadd.f32 %v1583_v55, %v1541_v6 }
 0x141   :  { %2292 = vmatprep.subr.bf16.mxu0 %v3264_v15  ;;  %2334 = vmatpush2.bf16.msra.mxu1 %v3307_v53  ;;  %v1544_v0 = vpop.f32.mrf.mxu0 }
 0x142   :  { %2335 = vmatprep.subr.bf16.mxu1 %v3312_v33  ;;  %v1587_v43 = vpop.f32.mrf.mxu1  ;;  %v1545_v5 = vadd.f32 %v1544_v0, %v335_v51  ;;  %v1586_v9 = vadd.f32 %v1585_v60, %v1543_v1 }
 0x144   :  { %2293 = vmatpush2.bf16.msra.mxu0 %v3262_v18  ;;  %v1588_v17 = vadd.f32 %v1587_v43, %v1545_v5 }
 0x145   :  { %2294 = vmatprep.subr.bf16.mxu0 %v3267_v20  ;;  %2336 = vmatpush2.bf16.msra.mxu1 %v3310_v35 }
 0x146   :  { %2337 = vmatprep.subr.bf16.mxu1 %v3315_v36  ;;  %v338_v36 = vsub.s32 2, %v3559_v52 }
 0x148   :  { %2295 = vmatpush2.bf16.msra.mxu0 %v3265_v24 }
 0x149   :  { %2296 = vmatprep.subr.bf16.mxu0 %v3270_v25  ;;  %2338 = vmatpush2.bf16.msra.mxu1 %v3313_v39 }
 0x14a   :  { %2339 = vmatprep.subr.bf16.mxu1 %v3318_v40 }
 0x14c   :  { %2297 = vmatpush2.bf16.msra.mxu0 %v3268_v28 }
 0x14d   :  { %2298 = vmatprep.subr.bf16.mxu0 %v3273_v29  ;;  %2340 = vmatpush2.bf16.msra.mxu1 %v3316_v41  ;;  %v339_v41 = vrot.slane %v326_v58, %v338_v36 }
 0x14e   :  { %2341 = vmatprep.subr.bf16.mxu1 %v3321_v42 }
 0x150   :  { %2299 = vmatpush2.bf16.msra.mxu0 %v3271_v7 }
 0x151   :  { %2300 = vmatprep.subr.bf16.mxu0 %v3276_v32  ;;  %2342 = vmatpush2.bf16.msra.mxu1 %v3319_v44 }
 0x152   :  { %2343 = vmatprep.subr.bf16.mxu1 %v3324_v45 }
 0x154   :  { %2301 = vmatpush2.bf16.msra.mxu0 %v3274_v34 }
 0x155   :  { %2302 = vmatprep.subr.bf16.mxu0 %v3279_v16  ;;  %2344 = vmatpush2.bf16.msra.mxu1 %v3322_v46 }
 0x156   :  { %2345 = vmatprep.subr.bf16.mxu1 %v3327_v48 }
 0x158   :  { %2303 = vmatpush2.bf16.msra.mxu0 %v3277_v38  ;;  %v342_v38 = vsub.s32 3, %v3559_v52 }
 0x159   :  { %2346 = vmatpush2.bf16.msra.mxu1 %v3325_v47 }
 0x15a   :  { %v343_v42 = vrot.slane %v326_v58, %v342_v38 }
 0x15c   :  { %v1667_v63 = vpop.f32.mrf.mxu1 }
 0x15e   :  { %v1669_v37 = vpop.f32.mrf.mxu1 }
 0x160   :  { %v1671_v13 = vpop.f32.mrf.mxu1 }
 0x162   :  { %v1673_v23 = vpop.f32.mrf.mxu1 }
 0x17b   :  { %v1624_v2 = vpop.f32.mrf.mxu0 }
 0x17c   :  { %v1625_v10 = vadd.f32 %v1624_v2, %v1582_v3 }
 0x17d   :  { %v1626_v8 = vpop.f32.mrf.mxu0 }
 0x17e   :  { %v1627_v11 = vadd.f32 %v1626_v8, %v1584_v4  ;;  %v1668_v20 = vadd.f32 %v1667_v63, %v1625_v10 }
 0x17f   :  { %v1628_v12 = vpop.f32.mrf.mxu0 }
 0x180   :  { %v1629_v15 = vadd.f32 %v1628_v12, %v1586_v9  ;;  %v1670_v18 = vadd.f32 %v1669_v37, %v1627_v11  ;;  %v1856_v27 = vmul.f32 0.2, %v1668_v20  ;;  %vm1848_vm2 = vcmp.gt.f32.partialorder %v1668_v20, 0.0 }
 0x181   :  { %v1630_v19 = vpop.f32.mrf.mxu0 }
 0x182   :  { %v1672_v21 = vadd.f32 %v1671_v13, %v1629_v15  ;;  %v1631_v22 = vadd.f32 %v1630_v19, %v1588_v17  ;;  %v1857_v25 = vmul.f32 0.2, %v1670_v18  ;;  %vm1849_vm1 = vcmp.gt.f32.partialorder %v1670_v18, 0.0 }
 0x183   :  { %v1864_v7 = vsel %vm1848_vm2, %v1668_v20, %v1856_v27  ;;  %v2464_v20 = vld [vmem:[#allocation11 + $0x8] sm:$0xff] }
 0x184   :  { %v1860_v24 = vmul.f32 0.2, %v1672_v21  ;;  %vm1852_vm0 = vcmp.gt.f32.partialorder %v1672_v21, 0.0  ;;  %v1674_v26 = vadd.f32 %v1673_v23, %v1631_v22  ;;  %v1865_v30 = vsel %vm1849_vm1, %v1670_v18, %v1857_v25  ;;  %v1940_v22 = vld [vmem:[%s3603_s5] sm:$0x3] }
 0x185   :  { %v1949_v25 = vrot.slane %v1940_v22, %v334_v57  ;;  %vm2447_vm1 = vcmask 1040384  }
 0x186   :  { %vm1853_vm3 = vcmp.gt.f32.partialorder %v1674_v26, 0.0  ;;  %v1861_v28 = vmul.f32 0.2, %v1674_v26  ;;  %v1868_v29 = vsel %vm1852_vm0, %v1672_v21, %v1860_v24  ;;  %v1945_v24 = vrot.slane %v1940_v22, %v330_v56 }
 0x187   :  { %v1872_v53 = vpack.c.bf16 %v1868_v29, %v1864_v7  ;;  %v2373_v29 = vstv %s3598_s0 }
 0x188   :  { %v1869_v31 = vsel %vm1853_vm3, %v1674_v26, %v1861_v28  ;;  %v2372_v28 = vadd.s32 8, %v3559_v52  ;;  %vm2374_vm8 = vcmp.lt.s32.totalorder %v3559_v52, %v2373_v29  ;;  %vm2550_vm3 = vcmask 122880  }
 0x189   :  { %v1873_v32 = vpack.c.bf16 %v1869_v31, %v1865_v30 }
 0x18a   :  { %vm2375_vm9 = vcmp.lt.s32.totalorder %v2372_v28, %v2373_v29 }
 0x18b   :  { %2304 = vmatprep.mubr.bf16.mxu0 %v1873_v32 }
 0x18c   :  { %2305 = vmatmul.mubr.bf16.vlgmr.msra.gmra.mxu0 %v1872_v53 }
 0x18d   :  { %2529 = vmatprep.mubr.f32.mxu0 %v2464_v20 }
 0x19c   :  { %v1710_v33 = vpop.f32.mrf.mxu1 }
 0x19d   :  { %v1711_v46 = vadd.f32 %v1710_v33, %v339_v41 }
 0x19e   :  { %v1712_v16 = vpop.f32.mrf.mxu1 }
 0x19f   :  { %v1713_v47 = vadd.f32 %v1712_v16, %v343_v42 }
 0x1a0   :  { %v1714_v39 = vpop.f32.mrf.mxu1 }
 0x1a1   :  { %v1715_v50 = vadd.f32 %v1714_v39, %v339_v41  ;;  %v3459_v39 = vmov 0.0  }
 0x1a2   :  { %v1716_v44 = vpop.f32.mrf.mxu1  ;;  %v2864_v41 = vsel %vm2374_vm8, 1.0, %v3459_v39 }
 0x1a3   :  { %v1717_v43 = vadd.f32 %v1716_v44, %v343_v42  ;;  %v2398_v42 = vstv %s93_s17 }
 0x1a4   :  { %3328 = vrcp.f32 %v2398_v42 }
 0x1bb   :  { %v1753_v34 = vpop.f32.mrf.mxu0 }
 0x1bc   :  { %v1754_v54 = vadd.f32 %v1753_v34, %v1711_v46 }
 0x1bd   :  { %v1755_v35 = vpop.f32.mrf.mxu0 }
 0x1be   :  { %v1756_v55 = vadd.f32 %v1755_v35, %v1713_v47 }
 0x1bf   :  { %v1757_v40 = vpop.f32.mrf.mxu0 }
 0x1c0   :  { %v1758_v61 = vadd.f32 %v1757_v40, %v1715_v50  ;;  %v2865_v40 = vsel %vm2375_vm9, 1.0, %v3459_v39 }
 0x1c1   :  { %v1759_v45 = vpop.f32.mrf.mxu0 }
 0x1c2   :  { %v1760_v0 = vadd.f32 %v1759_v45, %v1717_v43 }
 0x1db   :  { %v1839_v49 = vpop.f32.mrf.mxu0 }
 0x1dc   :  { %v1796_v48 = vpop.f32.mrf.mxu1 }
 0x1dd   :  { %v1841_v60 = vpop.f32.mrf.mxu0  ;;  %v1797_v51 = vadd.f32 %v1796_v48, %v1754_v54 }
 0x1de   :  { %v1798_v59 = vpop.f32.mrf.mxu1 }
 0x1df   :  { %v1799_v14 = vadd.f32 %v1798_v59, %v1756_v55  ;;  %v1843_v63 = vpop.f32.mrf.mxu0  ;;  %v1840_v2 = vadd.f32 %v1839_v49, %v1797_v51 }
 0x1e0   :  { %v1800_v62 = vpop.f32.mrf.mxu1 }
 0x1e1   :  { %v1801_v6 = vadd.f32 %v1800_v62, %v1758_v61  ;;  %v1842_v58 = vadd.f32 %v1841_v60, %v1799_v14  ;;  %v1845_v5 = vpop.f32.mrf.mxu0  ;;  %v1858_v10 = vmul.f32 0.2, %v1840_v2  ;;  %vm1850_vm6 = vcmp.gt.f32.partialorder %v1840_v2, 0.0  ;;  %v2463_v62 = vld [vmem:[#allocation11] sm:$0xff] }
 0x1e2   :  { %v1802_v1 = vpop.f32.mrf.mxu1 }
 0x1e3   :  { %v1844_v3 = vadd.f32 %v1843_v63, %v1801_v6  ;;  %v1803_v4 = vadd.f32 %v1802_v1, %v1760_v0  ;;  %v1859_v8 = vmul.f32 0.2, %v1842_v58  ;;  %vm1851_vm5 = vcmp.gt.f32.partialorder %v1842_v58, 0.0 }
 0x1e4   :  { %v1866_v17 = vsel %vm1850_vm6, %v1840_v2, %v1858_v10  ;;  %v2429_v10 = vstv %s2866_s21 }
 0x1e5   :  { %v1862_v37 = vmul.f32 0.2, %v1844_v3  ;;  %vm1854_vm4 = vcmp.gt.f32.partialorder %v1844_v3, 0.0  ;;  %v1846_v9 = vadd.f32 %v1845_v5, %v1803_v4  ;;  %v1867_v13 = vsel %vm1851_vm5, %v1842_v58, %v1859_v8 }
 0x1e6   :  { %3330 = vrcp.f32 %v2429_v10 }
 0x1e7   :  { %vm1855_vm7 = vcmp.gt.f32.partialorder %v1846_v9, 0.0  ;;  %v1863_v11 = vmul.f32 0.2, %v1846_v9  ;;  %v1870_v12 = vsel %vm1854_vm4, %v1844_v3, %v1862_v37  ;;  %v3329_v3 = vpop.eup %3328 }
 0x1e8   :  { %v1874_v19 = vpack.c.bf16 %v1870_v12, %v1866_v17 }
 0x1e9   :  { %v1871_v15 = vsel %vm1855_vm7, %v1846_v9, %v1863_v11 }
 0x1ea   :  { %v1875_v18 = vpack.c.bf16 %v1871_v15, %v1867_v13 }
 0x1ec   :  { %2347 = vmatprep.mubr.bf16.mxu1 %v1875_v18 }
 0x1ed   :  { %2348 = vmatmul.mubr.bf16.vlgmr.msra.gmra.mxu1 %v1874_v19 }
 0x24c   :  { %v2306_v21 = vpop.f32.mrf.mxu0 }
 0x24d   :  { %v2307_v27 = vadd.f32 %v2306_v21, %v1945_v24 }
 0x24e   :  { %v2308_v23 = vpop.f32.mrf.mxu0 }
 0x24f   :  { %v2309_v31 = vadd.f32 %v2308_v23, %v1949_v25 }
 0x250   :  { %v2310_v26 = vpop.f32.mrf.mxu0 }
 0x251   :  { %v2311_v56 = vadd.f32 %v2310_v26, %v1945_v24 }
 0x252   :  { %v2312_v32 = vpop.f32.mrf.mxu0 }
 0x253   :  { %v2313_v16 = vadd.f32 %v2312_v32, %v1949_v25 }
 0x2ad   :  { %v2349_v30 = vpop.f32.mrf.mxu1 }
 0x2ae   :  { %v2350_v7 = vadd.f32 %v2349_v30, %v2307_v27 }
 0x2af   :  { %v2351_v53 = vpop.f32.mrf.mxu1 }
 0x2b0   :  { %v2362_v57 = vmul.f32 0.2, %v2350_v7  ;;  %v2352_v33 = vadd.f32 %v2351_v53, %v2309_v31  ;;  %vm2358_vm10 = vcmp.gt.f32.partialorder %v2350_v7, 0.0  ;;  %v3331_v53 = vpop.eup %3330 }
 0x2b1   :  { %v2353_v34 = vpop.f32.mrf.mxu1 }
 0x2b2   :  { %v2363_v35 = vmul.f32 0.2, %v2352_v33  ;;  %v2354_v36 = vadd.f32 %v2353_v34, %v2311_v56  ;;  %vm2359_vm11 = vcmp.gt.f32.partialorder %v2352_v33, 0.0  ;;  %v2366_v45 = vsel %vm2358_vm10, %v2350_v7, %v2362_v57 }
 0x2b3   :  { %v2355_v38 = vpop.f32.mrf.mxu1  ;;  %v2380_v50 = vmul.f32 %v2864_v41, %v2366_v45 }
 0x2b4   :  { %vm2360_vm12 = vcmp.gt.f32.partialorder %v2354_v36, 0.0  ;;  %v2364_v52 = vmul.f32 0.2, %v2354_v36  ;;  %v2356_v44 = vadd.f32 %v2355_v38, %v2313_v16  ;;  %v2367_v48 = vsel %vm2359_vm11, %v2352_v33, %v2363_v35 }
 0x2b5   :  { %v2381_v59 = vmul.f32 %v2864_v41, %v2367_v48 }
 0x2b6   :  { %v2365_v46 = vmul.f32 0.2, %v2356_v44  ;;  %vm2361_vm13 = vcmp.gt.f32.partialorder %v2356_v44, 0.0  ;;  %v2368_v47 = vsel %vm2360_vm12, %v2354_v36, %v2364_v52 }
 0x2b7   :  { %v2382_v49 = vmul.f32 %v2865_v40, %v2368_v47 }
 0x2b8   :  { %v2369_v54 = vsel %vm2361_vm13, %v2356_v44, %v2365_v46 }
 0x2b9   :  { %v2383_v55 = vmul.f32 %v2865_v40, %v2369_v54  ;;  %2493 = vmatprep.subr.mxu0 %v2369_v54  ;;  %v2384_v60 = vadd.f32 %v2382_v49, %v2380_v50 }
 0x2ba   :  { %2494 = vmatpush1.xpose.msra.mxu0 %v2368_v47 }
 0x2bb   :  { %v2391_v61 = vadd.f32 %v2383_v55, %v2381_v59  ;;  %2495 = vmatprep.subr.mxu0 %v2367_v48  ;;  %v2385_v51 = vrot.slane %v2384_v60, 4 }
 0x2bd   :  { %v2392_v14 = vrot.slane %v2391_v61, 4  ;;  %v2386_v43 = vadd.f32 %v2385_v51, %v2384_v60 }
 0x2be   :  { %2496 = vmatpush1.xpose.msra.mxu0 %v2366_v45 }
 0x2bf   :  { %v2393_v6 = vadd.f32 %v2392_v14, %v2391_v61  ;;  %v2387_v63 = vrot.slane %v2386_v43, 2 }
 0x2c1   :  { %v2394_v0 = vrot.slane %v2393_v6, 2  ;;  %v2388_v58 = vadd.f32 %v2387_v63, %v2386_v43  ;;  %2530 = vmatmul.mubr.f32.vlgmr.msra.gmra.mxu0 %v2463_v62  ;;  %v2540_v63 = vld [vmem:[#allocation4] sm:$0x1] }
 0x2c3   :  { %v2395_v1 = vadd.f32 %v2394_v0, %v2393_v6  ;;  %v2389_v2 = vrot.slane %v2388_v58, 1  ;;  %v2535_v6 = vld [vmem:[#allocation3] sm:$0x1] }
 0x2c5   :  { %v2396_v4 = vrot.slane %v2395_v1, 1  ;;  %v2390_v37 = vadd.f32 %v2389_v2, %v2388_v58 }
 0x2c7   :  { %v2397_v5 = vadd.f32 %v2396_v4, %v2395_v1  ;;  %v2400_v8 = vmul.f32 %v3329_v3, %v2390_v37 }
 0x2c9   :  { %v2401_v9 = vmul.f32 %v3329_v3, %v2397_v5  ;;  %v2402_v11 = vsub.f32 %v2366_v45, %v2400_v8  ;;  %v2404_v12 = vsub.f32 %v2368_v47, %v2400_v8 }
 0x2cb   :  { %v2403_v13 = vsub.f32 %v2367_v48, %v2401_v9  ;;  %v2405_v15 = vsub.f32 %v2369_v54, %v2401_v9  ;;  %v2406_v17 = vmul.f32 %v2864_v41, %v2402_v11  ;;  %v2408_v18 = vmul.f32 %v2865_v40, %v2404_v12 }
 0x2cd   :  { %v2407_v19 = vmul.f32 %v2864_v41, %v2403_v13  ;;  %v2409_v20 = vmul.f32 %v2865_v40, %v2405_v15  ;;  %v2410_v21 = vmul.f32 %v2406_v17, %v2406_v17  ;;  %v2412_v22 = vmul.f32 %v2408_v18, %v2408_v18 }
 0x2cf   :  { %v2411_v23 = vmul.f32 %v2407_v19, %v2407_v19  ;;  %v2413_v24 = vmul.f32 %v2409_v20, %v2409_v20  ;;  %v2414_v25 = vadd.f32 %v2412_v22, %v2410_v21 }
 0x2d1   :  { %v2421_v26 = vadd.f32 %v2413_v24, %v2411_v23  ;;  %v2415_v27 = vrot.slane %v2414_v25, 4 }
 0x2d3   :  { %v2422_v28 = vrot.slane %v2421_v26, 4  ;;  %v2416_v29 = vadd.f32 %v2415_v27, %v2414_v25 }
 0x2d5   :  { %v2423_v30 = vadd.f32 %v2422_v28, %v2421_v26  ;;  %v2417_v31 = vrot.slane %v2416_v29, 2 }
 0x2d7   :  { %v2424_v7 = vrot.slane %v2423_v30, 2  ;;  %v2418_v32 = vadd.f32 %v2417_v31, %v2416_v29 }
 0x2d9   :  { %v2425_v56 = vadd.f32 %v2424_v7, %v2423_v30  ;;  %v2419_v57 = vrot.slane %v2418_v32, 1 }
 0x2db   :  { %v2426_v33 = vrot.slane %v2425_v56, 1  ;;  %v2420_v34 = vadd.f32 %v2419_v57, %v2418_v32 }
 0x2dd   :  { %v2427_v16 = vadd.f32 %v2426_v33, %v2425_v56  ;;  %v2431_v35 = vmul.f32 %v3331_v53, %v2420_v34 }
 0x2df   :  { %v2432_v36 = vmul.f32 %v3331_v53, %v2427_v16  ;;  %3332 = vrsqrt.f32 %v2431_v35  ;;  %vm2435_vm14 = vcmp.eq.f32.partialorder %v2431_v35, inf  ;;  %v2438_v41 = vand.u32 2147483648, %v2431_v35 }
 0x2e0   :  { %vm2437_vm15 = vcmp.eq.f32.partialorder %v2431_v35, 0.0 }
 0x2e1   :  { %3334 = vrsqrt.f32 %v2432_v36  ;;  %vm2442_vm0 = vcmp.eq.f32.partialorder %v2432_v36, inf  ;;  %v2445_v45 = vand.u32 2147483648, %v2432_v36  ;;  %vm2444_vm2 = vcmp.eq.f32.partialorder %v2432_v36, 0.0 }
 0x2ec   :  { %v3333_v38 = vpop.eup %3332 }
 0x2ed   :  { %v2434_v39 = vmul.f32 %v3333_v38, %v2431_v35 }
 0x2ee   :  { %v3335_v40 = vpop.eup %3334 }
 0x2ef   :  { %v2436_v42 = vsel %vm2435_vm14, %v2431_v35, %v2434_v39  ;;  %v2441_v52 = vmul.f32 %v3335_v40, %v2432_v36 }
 0x2f0   :  { %v2439_v44 = vsel %vm2437_vm15, %v2438_v41, %v2436_v42 }
 0x2f1   :  { %v2443_v46 = vsel %vm2442_vm0, %v2432_v36, %v2441_v52  ;;  %v2448_v48 = vsel %vm2447_vm1, %v2439_v44, 0.0 }
 0x2f2   :  { %v2446_v47 = vsel %vm2444_vm2, %v2445_v45, %v2443_v46 }
 0x2f3   :  { %v2449_v49 = vsel %vm2447_vm1, %v2446_v47, 0.0 }
 0x2f4   :  { %v2450_v50 = vadd.f32 %v2449_v49, %v2448_v48 }
 0x2f6   :  { %2451 = vadd.xlane.f32.xlu0 %v2450_v50 }
 0x37f   :  { %v2452_v54 = vpop.xlane.xlu0 %2451 }
 0x380   :  { %v2453_v55 = vrot.slane %v2452_v54, 4 }
 0x381   :  { %v2531_v59 = vpop.f32.mrf.mxu0 }
 0x382   :  { %v2454_v60 = vadd.f32 %v2453_v55, %v2452_v54 }
 0x383   :  { %v2533_v61 = vpop.f32.mrf.mxu0 }
 0x384   :  { %v2455_v51 = vrot.slane %v2454_v60, 2 }
 0x386   :  { %v2456_v14 = vadd.f32 %v2455_v51, %v2454_v60 }
 0x388   :  { %v2457_v43 = vrot.slane %v2456_v14, 1 }
 0x38a   :  { %v2458_v62 = vadd.f32 %v2457_v43, %v2456_v14 }
 0x38c   :  { %2867 = vpush %v2458_v62 }
 0x38d   :  { %2869 = vpush %v2535_v6 }
 0x38e   :  { %2871 = vpush %v2540_v63 }
 0x3bd   :  { %s2868_s0 = spop %2867 }
 0x3be   :  { %s2462_s22 = smul.f32 0.00390625, %s2868_s0  ;;  %s2870_s23 = spop %2869 }
 0x3bf   :  { %s2872_s24 = spop %2871 }
 0x3c0   :  { %s2537_s25 = smul.f32 %s2870_s23, %s2462_s22  ;;  %v2542_v58 = vstv %s2872_s24 }
 0x3c2   :  { %v2538_v0 = vstv %s2537_s25 }
 0x3c3   :  { %v2539_v1 = vadd.f32 %v2538_v0, %v2531_v59 }
 0x3c5   :  { %v2543_v2 = vadd.f32 %v2542_v58, %v2539_v1 }
 0x3c7   :  { %v2544_v3 = vsub.f32 0.0, %v2543_v2 }
 0x3c9   :  { %v2545_v4 = vmul.f32 1.442695, %v2544_v3 }
 0x3cb   :  { %3336 = vpow2.f32 %v2545_v4 }
 0x3d8   :  { %v3337_v37 = vpop.eup %3336 }
 0x3d9   :  { %v2547_v5 = vadd.f32 1.0, %v3337_v37 }
 0x3db   :  { %3338 = vrcp.f32 %v2547_v5 }
 0x3e8   :  { %v3339_v8 = vpop.eup %3338 }
 0x3e9   :  { %2551 = vst.msk [vmem:[#allocation13] sm:$0x1] %vm2550_vm3, %v3339_v8 }
 0x3ea   :  { %3431 = shalt.err (!%p3428_p10)
}
 0x3eb   :  { %2561 = dma.vmem_to_hbm [thread:$0]  %s2559_s2, 16, %s3606_s9, [#allocation7]  }
 0x3ec   :  { %3446 = dma.done.wait [#allocation7], 16  }
 0x3ed   :  { %3447 = vsyncadd [#allocation7], 4294967280 }
 0x3ee   :  { %2565 = vsyncpa [#allocation6], 1 }
 0x3ef   :  { %2566 = vsyncpa [#allocation9], 1 }
 0x3f0   :  { %2567 = vsyncpa [#allocation12], 1 }
 0x3f1   :  { %2568 = vsyncpa [#allocation7], 1 }

</bundles_post_ra>
